<compile_context>
chip_gen: v7x
topology: tpu7x:2x2x1
jax: 0.10.0
libtpu: 0.0.40
codegen_flags: <defaults>
</compile_context>

<pallas_src>
import math

import jax
import jax.numpy as jnp
from jax import lax
from jax.experimental import pallas as pl
from jax.experimental.pallas import tpu as pltpu

HIDDEN = 50
HIDDEN_PAD = 128  # one full lane group per gate


def _stock_lstm_kernel(x_ref, wih_ref, whh_ref, b_ref, wl_ref, bl_ref,
                       out_ref, pre_ref, hs_ref):
    # x_ref:   (T, B, 1)      time-major input
    # wih_ref: (1, 4*Hp)      W_ih^T, gate order [i, f, o, g], zero-padded
    # whh_ref: (Hp, 4*Hp)     W_hh^T, gate order [i, f, o, g], zero-padded
    # b_ref:   (1, 4*Hp)      b_ih + b_hh, gate order [i, f, o, g], zero-padded
    # wl_ref:  (1, Hp)        linear weight, zero-padded
    # bl_ref:  (1, 1)         linear bias
    # out_ref: (T, B, 1)      per-timestep linear output
    # pre_ref: (T, B, 4*Hp)   VMEM scratch: precomputed input/bias contribution
    # hs_ref:  (T, B, Hp)     VMEM scratch: hidden-state history
    T = x_ref.shape[0]
    B = x_ref.shape[1]
    Hp = whh_ref.shape[0]

    whh = whh_ref[...]

    # Hoisted, fully vectorized input + bias contribution for all T steps.
    # Zero-padded weight/bias columns keep padded gate lanes at exactly 0.
    pre_ref[...] = x_ref[...] * wih_ref[...] + b_ref[...]        # (T, B, 4Hp)

    def step(t, carry):
        h, c = carry                                             # (B, Hp), (B, Hp)
        gates = pre_ref[t] + jnp.dot(h, whh,
                                     preferred_element_type=jnp.float32)  # (B, 4Hp)
        # Gate order [i, f, o, g]: one sigmoid slab, one tanh slab (lane-aligned).
        sig = jax.nn.sigmoid(gates[:, : 3 * Hp])
        g_g = jnp.tanh(gates[:, 3 * Hp:])
        i_g = sig[:, 0 * Hp:1 * Hp]
        f_g = sig[:, 1 * Hp:2 * Hp]
        o_g = sig[:, 2 * Hp:3 * Hp]
        c_new = f_g * c + i_g * g_g                              # padded lanes stay 0
        h_new = o_g * jnp.tanh(c_new)
        hs_ref[t] = h_new
        return (h_new, c_new)

    h0 = jnp.zeros((B, Hp), jnp.float32)
    c0 = jnp.zeros((B, Hp), jnp.float32)
    # Fully unrolled: static small T, gives the scheduler cross-step visibility.
    lax.fori_loop(0, T, step, (h0, c0), unroll=True)

    # Hoisted final Linear: y = <h_t, w_lin> + b_lin, done once for all steps.
    # Output dim is 1 so a broadcast-mul + lane reduction is the cheapest form.
    y = jnp.sum(hs_ref[...] * wl_ref[...], axis=-1, keepdims=True)  # (T, B, 1)
    out_ref[...] = y + bl_ref[...]


def _prep_gate_cols(m_t, H, Hp):
    """m_t: (r, 4H) in PyTorch gate order [i,f,g,o] along axis 1.
    Returns (r, 4Hp) reordered to [i,f,o,g] with each gate block zero-padded."""
    i, f, g, o = (m_t[:, k * H:(k + 1) * H] for k in range(4))
    pad = lambda a: jnp.pad(a, ((0, 0), (0, Hp - H)))
    return jnp.concatenate([pad(i), pad(f), pad(o), pad(g)], axis=1)


def stock_model_forward(x, params):
    """x: (B, T, 1) float32 -> (B, T, 1) float32, matching PyTorch StockModel.forward."""
    wih, whh, bih, bhh, wlin, blin = params
    B, T, _ = x.shape
    H = whh.shape[1]
    Hp = HIDDEN_PAD

    x_tb = jnp.transpose(x, (1, 0, 2)).astype(jnp.float32)                 # (T, B, 1)

    wih_t = _prep_gate_cols(wih.T.astype(jnp.float32), H, Hp)              # (1, 4Hp)
    whh_t = _prep_gate_cols(whh.T.astype(jnp.float32), H, Hp)              # (H, 4Hp)
    whh_t = jnp.pad(whh_t, ((0, Hp - H), (0, 0)))                          # (Hp, 4Hp)
    b_t = _prep_gate_cols((bih + bhh)[None, :].astype(jnp.float32), H, Hp) # (1, 4Hp)
    wl = jnp.pad(wlin.astype(jnp.float32), ((0, 0), (0, Hp - H)))          # (1, Hp)
    bl = blin[None, :].astype(jnp.float32)                                 # (1, 1)

    vmem = pl.BlockSpec(memory_space=pltpu.MemorySpace.VMEM)
    out_tb = pl.pallas_call(
        _stock_lstm_kernel,
        out_shape=jax.ShapeDtypeStruct((T, B, 1), jnp.float32),
        in_specs=[vmem] * 6,
        out_specs=vmem,
        scratch_shapes=[
            pltpu.VMEM((T, B, 4 * Hp), jnp.float32),   # precomputed gate inputs
            pltpu.VMEM((T, B, Hp), jnp.float32),       # hidden-state history
        ],
    )(x_tb, wih_t, whh_t, b_t, wl, bl)

    return jnp.transpose(out_tb, (1, 0, 2))                                # (B, T, 1)


def ref_forward(x, params):
    """Pure-JAX reference matching torch.nn.LSTM (gate order i,f,g,o) + Linear."""
    wih, whh, bih, bhh, wlin, blin = params
    B, T, _ = x.shape
    H = whh.shape[1]

    def step(carry, x_t):
        h, c = carry
        gates = x_t @ wih.T + h @ whh.T + bih + bhh
        i_g, f_g, g_g, o_g = jnp.split(gates, 4, axis=1)
        i_g = jax.nn.sigmoid(i_g)
        f_g = jax.nn.sigmoid(f_g)
        g_g = jnp.tanh(g_g)
        o_g = jax.nn.sigmoid(o_g)
        c = f_g * c + i_g * g_g
        h = o_g * jnp.tanh(c)
        return (h, c), h

    xs = jnp.transpose(x, (1, 0, 2))                              # (T, B, 1)
    (_, _), hs = lax.scan(step, (jnp.zeros((B, H)), jnp.zeros((B, H))), xs)
    hs = jnp.transpose(hs, (1, 0, 2))                             # (B, T, H)
    return hs @ wlin.T + blin                                     # (B, T, 1)


def init_params(key, hidden=HIDDEN, input_size=1):
    # PyTorch default init: U(-1/sqrt(H), 1/sqrt(H)) for all LSTM params,
    # U(-1/sqrt(fan_in), 1/sqrt(fan_in)) for Linear. Deterministic via PRNGKey.
    k = 1.0 / math.sqrt(hidden)
    ks = jax.random.split(key, 6)
    wih = jax.random.uniform(ks[0], (4 * hidden, input_size), jnp.float32, -k, k)
    whh = jax.random.uniform(ks[1], (4 * hidden, hidden), jnp.float32, -k, k)
    bih = jax.random.uniform(ks[2], (4 * hidden,), jnp.float32, -k, k)
    bhh = jax.random.uniform(ks[3], (4 * hidden,), jnp.float32, -k, k)
    wlin = jax.random.uniform(ks[4], (1, hidden), jnp.float32, -k, k)
    blin = jax.random.uniform(ks[5], (1,), jnp.float32, -k, k)
    return (wih, whh, bih, bhh, wlin, blin)


if __name__ == "__main__":
    key = jax.random.PRNGKey(0)
    pkey, xkey = jax.random.split(key)

    B, T = 2, 8  # batch=2, seq=8, feature=1 (matches nn.LSTM(input_size=1))
    params = init_params(pkey)
    x = jax.random.normal(xkey, (B, T, 1), dtype=jnp.float32)

    out = stock_model_forward(x, params)
    out = jax.block_until_ready(out)

    assert out.shape == (B, T, 1), out.shape

    ref = jax.block_until_ready(ref_forward(x, params))
    if not jnp.allclose(out, ref, atol=1e-3, rtol=1e-3):
        raise AssertionError(
            f"mismatch vs reference, max abs diff = {float(jnp.max(jnp.abs(out - ref)))}")

    print("KERNEL_OK")
</pallas_src>

<mosaic_0001>
module attributes {stable_mosaic.version = 11 : i64} {
  func.func @_stock_lstm_kernel(%arg0: memref<8x2x1xf32, #tpu.memory_space<vmem>>, %arg1: memref<1x512xf32, #tpu.memory_space<vmem>>, %arg2: memref<128x512xf32, #tpu.memory_space<vmem>>, %arg3: memref<1x512xf32, #tpu.memory_space<vmem>>, %arg4: memref<1x128xf32, #tpu.memory_space<vmem>>, %arg5: memref<1x1xf32, #tpu.memory_space<vmem>>, %arg6: memref<8x2x1xf32, #tpu.memory_space<vmem>>, %arg7: memref<8x2x512xf32, #tpu.memory_space<vmem>>, %arg8: memref<8x2x128xf32, #tpu.memory_space<vmem>>) attributes {dimension_semantics = [], scalar_prefetch = 0 : i64, scratch_operands = 2 : i64, tpu.core_type = #tpu.core_type<tc>} {
    %c0 = arith.constant 0 : index
    %c0_0 = arith.constant 0 : index
    %0 = vector.load %arg2[%c0, %c0_0] : memref<128x512xf32, #tpu.memory_space<vmem>>, vector<128x512xf32>
    %c0_1 = arith.constant 0 : index
    %c0_2 = arith.constant 0 : index
    %c0_3 = arith.constant 0 : index
    %1 = vector.load %arg0[%c0_1, %c0_2, %c0_3] : memref<8x2x1xf32, #tpu.memory_space<vmem>>, vector<8x2x1xf32>
    %c0_4 = arith.constant 0 : index
    %c0_5 = arith.constant 0 : index
    %2 = vector.load %arg1[%c0_4, %c0_5] : memref<1x512xf32, #tpu.memory_space<vmem>>, vector<1x512xf32>
    %3 = vector.shape_cast %2 : vector<1x512xf32> to vector<1x1x512xf32>
    %4 = vector.broadcast %1 : vector<8x2x1xf32> to vector<8x2x512xf32>
    %5 = vector.broadcast %3 : vector<1x1x512xf32> to vector<8x2x512xf32>
    %6 = arith.mulf %4, %5 : vector<8x2x512xf32>
    %c0_6 = arith.constant 0 : index
    %c0_7 = arith.constant 0 : index
    %7 = vector.load %arg3[%c0_6, %c0_7] : memref<1x512xf32, #tpu.memory_space<vmem>>, vector<1x512xf32>
    %8 = vector.shape_cast %7 : vector<1x512xf32> to vector<1x1x512xf32>
    %9 = vector.broadcast %8 : vector<1x1x512xf32> to vector<8x2x512xf32>
    %10 = arith.addf %6, %9 : vector<8x2x512xf32>
    %c0_8 = arith.constant 0 : index
    %c0_9 = arith.constant 0 : index
    %c0_10 = arith.constant 0 : index
    %11 = vector.load %arg7[%c0_8, %c0_9, %c0_10] : memref<8x2x512xf32, #tpu.memory_space<vmem>>, vector<8x2x512xf32>
    tpu.vector_store %arg7[%c0_8, %c0_9, %c0_10], %10 {strides = array<i32>} : memref<8x2x512xf32, #tpu.memory_space<vmem>>, vector<8x2x512xf32>,
    %cst = arith.constant 0.000000e+00 : f32
    %12 = vector.broadcast %cst : f32 to vector<2x128xf32>
    %cst_11 = arith.constant 0.000000e+00 : f32
    %13 = vector.broadcast %cst_11 : f32 to vector<2x128xf32>
    %c0_i32 = arith.constant 0 : i32
    %14 = arith.index_cast %c0_i32 : i32 to index
    %c0_12 = arith.constant 0 : index
    %c0_13 = arith.constant 0 : index
    %15 = vector.load %arg7[%14, %c0_12, %c0_13] : memref<8x2x512xf32, #tpu.memory_space<vmem>>, vector<1x2x512xf32>
    %16 = vector.shape_cast %15 : vector<1x2x512xf32> to vector<2x512xf32>
    %cst_14 = arith.constant dense<0.000000e+00> : vector<2x512xf32>
    %17 = tpu.matmul %12, %0, %cst_14 {dimension_numbers = #tpu.dot_dimension_numbers<[1], [0], [0], [1], [0, 0, 1, 1], [], []>} : vector<2x128xf32>, vector<128x512xf32>, vector<2x512xf32> -> vector<2x512xf32>
    %18 = arith.addf %16, %17 : vector<2x512xf32>
    %19 = vector.extract_strided_slice %18 {offsets = [0, 0], sizes = [2, 384], strides = [1, 1]} : vector<2x512xf32> to vector<2x384xf32>
    %20 = arith.negf %19 : vector<2x384xf32>
    %21 = math.exp %20 : vector<2x384xf32>
    %cst_15 = arith.constant 1.000000e+00 : f32
    %22 = vector.broadcast %cst_15 : f32 to vector<2x384xf32>
    %23 = arith.addf %22, %21 : vector<2x384xf32>
    %24 = arith.divf %22, %23 : vector<2x384xf32>
    %25 = vector.extract_strided_slice %18 {offsets = [0, 384], sizes = [2, 128], strides = [1, 1]} : vector<2x512xf32> to vector<2x128xf32>
    %26 = math.tanh %25 : vector<2x128xf32>
    %27 = vector.extract_strided_slice %24 {offsets = [0, 0], sizes = [2, 128], strides = [1, 1]} : vector<2x384xf32> to vector<2x128xf32>
    %28 = vector.extract_strided_slice %24 {offsets = [0, 128], sizes = [2, 128], strides = [1, 1]} : vector<2x384xf32> to vector<2x128xf32>
    %29 = vector.extract_strided_slice %24 {offsets = [0, 256], sizes = [2, 128], strides = [1, 1]} : vector<2x384xf32> to vector<2x128xf32>
    %30 = arith.mulf %28, %13 : vector<2x128xf32>
    %31 = arith.mulf %27, %26 : vector<2x128xf32>
    %32 = arith.addf %30, %31 : vector<2x128xf32>
    %33 = math.tanh %32 : vector<2x128xf32>
    %34 = arith.mulf %29, %33 : vector<2x128xf32>
    %35 = arith.index_cast %c0_i32 : i32 to index
    %c0_16 = arith.constant 0 : index
    %c0_17 = arith.constant 0 : index
    %36 = vector.load %arg8[%35, %c0_16, %c0_17] : memref<8x2x128xf32, #tpu.memory_space<vmem>>, vector<1x2x128xf32>
    %37 = vector.shape_cast %36 : vector<1x2x128xf32> to vector<2x128xf32>
    %38 = vector.shape_cast %34 : vector<2x128xf32> to vector<1x2x128xf32>
    tpu.vector_store %arg8[%35, %c0_16, %c0_17], %38 {strides = array<i32>} : memref<8x2x128xf32, #tpu.memory_space<vmem>>, vector<1x2x128xf32>,
    %c1_i32 = arith.constant 1 : i32
    %39 = arith.index_cast %c1_i32 : i32 to index
    %c0_18 = arith.constant 0 : index
    %c0_19 = arith.constant 0 : index
    %40 = vector.load %arg7[%39, %c0_18, %c0_19] : memref<8x2x512xf32, #tpu.memory_space<vmem>>, vector<1x2x512xf32>
    %41 = vector.shape_cast %40 : vector<1x2x512xf32> to vector<2x512xf32>
    %cst_20 = arith.constant dense<0.000000e+00> : vector<2x512xf32>
    %42 = tpu.matmul %34, %0, %cst_20 {dimension_numbers = #tpu.dot_dimension_numbers<[1], [0], [0], [1], [0, 0, 1, 1], [], []>} : vector<2x128xf32>, vector<128x512xf32>, vector<2x512xf32> -> vector<2x512xf32>
    %43 = arith.addf %41, %42 : vector<2x512xf32>
    %44 = vector.extract_strided_slice %43 {offsets = [0, 0], sizes = [2, 384], strides = [1, 1]} : vector<2x512xf32> to vector<2x384xf32>
    %45 = arith.negf %44 : vector<2x384xf32>
    %46 = math.exp %45 : vector<2x384xf32>
    %cst_21 = arith.constant 1.000000e+00 : f32
    %47 = vector.broadcast %cst_21 : f32 to vector<2x384xf32>
    %48 = arith.addf %47, %46 : vector<2x384xf32>
    %49 = arith.divf %47, %48 : vector<2x384xf32>
    %50 = vector.extract_strided_slice %43 {offsets = [0, 384], sizes = [2, 128], strides = [1, 1]} : vector<2x512xf32> to vector<2x128xf32>
    %51 = math.tanh %50 : vector<2x128xf32>
    %52 = vector.extract_strided_slice %49 {offsets = [0, 0], sizes = [2, 128], strides = [1, 1]} : vector<2x384xf32> to vector<2x128xf32>
    %53 = vector.extract_strided_slice %49 {offsets = [0, 128], sizes = [2, 128], strides = [1, 1]} : vector<2x384xf32> to vector<2x128xf32>
    %54 = vector.extract_strided_slice %49 {offsets = [0, 256], sizes = [2, 128], strides = [1, 1]} : vector<2x384xf32> to vector<2x128xf32>
    %55 = arith.mulf %53, %32 : vector<2x128xf32>
    %56 = arith.mulf %52, %51 : vector<2x128xf32>
    %57 = arith.addf %55, %56 : vector<2x128xf32>
    %58 = math.tanh %57 : vector<2x128xf32>
    %59 = arith.mulf %54, %58 : vector<2x128xf32>
    %60 = arith.index_cast %c1_i32 : i32 to index
    %c0_22 = arith.constant 0 : index
    %c0_23 = arith.constant 0 : index
    %61 = vector.load %arg8[%60, %c0_22, %c0_23] : memref<8x2x128xf32, #tpu.memory_space<vmem>>, vector<1x2x128xf32>
    %62 = vector.shape_cast %61 : vector<1x2x128xf32> to vector<2x128xf32>
    %63 = vector.shape_cast %59 : vector<2x128xf32> to vector<1x2x128xf32>
    tpu.vector_store %arg8[%60, %c0_22, %c0_23], %63 {strides = array<i32>} : memref<8x2x128xf32, #tpu.memory_space<vmem>>, vector<1x2x128xf32>,
    %c2_i32 = arith.constant 2 : i32
    %64 = arith.index_cast %c2_i32 : i32 to index
    %c0_24 = arith.constant 0 : index
    %c0_25 = arith.constant 0 : index
    %65 = vector.load %arg7[%64, %c0_24, %c0_25] : memref<8x2x512xf32, #tpu.memory_space<vmem>>, vector<1x2x512xf32>
    %66 = vector.shape_cast %65 : vector<1x2x512xf32> to vector<2x512xf32>
    %cst_26 = arith.constant dense<0.000000e+00> : vector<2x512xf32>
    %67 = tpu.matmul %59, %0, %cst_26 {dimension_numbers = #tpu.dot_dimension_numbers<[1], [0], [0], [1], [0, 0, 1, 1], [], []>} : vector<2x128xf32>, vector<128x512xf32>, vector<2x512xf32> -> vector<2x512xf32>
    %68 = arith.addf %66, %67 : vector<2x512xf32>
    %69 = vector.extract_strided_slice %68 {offsets = [0, 0], sizes = [2, 384], strides = [1, 1]} : vector<2x512xf32> to vector<2x384xf32>
    %70 = arith.negf %69 : vector<2x384xf32>
    %71 = math.exp %70 : vector<2x384xf32>
    %cst_27 = arith.constant 1.000000e+00 : f32
    %72 = vector.broadcast %cst_27 : f32 to vector<2x384xf32>
    %73 = arith.addf %72, %71 : vector<2x384xf32>
    %74 = arith.divf %72, %73 : vector<2x384xf32>
    %75 = vector.extract_strided_slice %68 {offsets = [0, 384], sizes = [2, 128], strides = [1, 1]} : vector<2x512xf32> to vector<2x128xf32>
    %76 = math.tanh %75 : vector<2x128xf32>
    %77 = vector.extract_strided_slice %74 {offsets = [0, 0], sizes = [2, 128], strides = [1, 1]} : vector<2x384xf32> to vector<2x128xf32>
    %78 = vector.extract_strided_slice %74 {offsets = [0, 128], sizes = [2, 128], strides = [1, 1]} : vector<2x384xf32> to vector<2x128xf32>
    %79 = vector.extract_strided_slice %74 {offsets = [0, 256], sizes = [2, 128], strides = [1, 1]} : vector<2x384xf32> to vector<2x128xf32>
    %80 = arith.mulf %78, %57 : vector<2x128xf32>
    %81 = arith.mulf %77, %76 : vector<2x128xf32>
    %82 = arith.addf %80, %81 : vector<2x128xf32>
    %83 = math.tanh %82 : vector<2x128xf32>
    %84 = arith.mulf %79, %83 : vector<2x128xf32>
    %85 = arith.index_cast %c2_i32 : i32 to index
    %c0_28 = arith.constant 0 : index
    %c0_29 = arith.constant 0 : index
    %86 = vector.load %arg8[%85, %c0_28, %c0_29] : memref<8x2x128xf32, #tpu.memory_space<vmem>>, vector<1x2x128xf32>
    %87 = vector.shape_cast %86 : vector<1x2x128xf32> to vector<2x128xf32>
    %88 = vector.shape_cast %84 : vector<2x128xf32> to vector<1x2x128xf32>
    tpu.vector_store %arg8[%85, %c0_28, %c0_29], %88 {strides = array<i32>} : memref<8x2x128xf32, #tpu.memory_space<vmem>>, vector<1x2x128xf32>,
    %c3_i32 = arith.constant 3 : i32
    %89 = arith.index_cast %c3_i32 : i32 to index
    %c0_30 = arith.constant 0 : index
    %c0_31 = arith.constant 0 : index
    %90 = vector.load %arg7[%89, %c0_30, %c0_31] : memref<8x2x512xf32, #tpu.memory_space<vmem>>, vector<1x2x512xf32>
    %91 = vector.shape_cast %90 : vector<1x2x512xf32> to vector<2x512xf32>
    %cst_32 = arith.constant dense<0.000000e+00> : vector<2x512xf32>
    %92 = tpu.matmul %84, %0, %cst_32 {dimension_numbers = #tpu.dot_dimension_numbers<[1], [0], [0], [1], [0, 0, 1, 1], [], []>} : vector<2x128xf32>, vector<128x512xf32>, vector<2x512xf32> -> vector<2x512xf32>
    %93 = arith.addf %91, %92 : vector<2x512xf32>
    %94 = vector.extract_strided_slice %93 {offsets = [0, 0], sizes = [2, 384], strides = [1, 1]} : vector<2x512xf32> to vector<2x384xf32>
    %95 = arith.negf %94 : vector<2x384xf32>
    %96 = math.exp %95 : vector<2x384xf32>
    %cst_33 = arith.constant 1.000000e+00 : f32
    %97 = vector.broadcast %cst_33 : f32 to vector<2x384xf32>
    %98 = arith.addf %97, %96 : vector<2x384xf32>
    %99 = arith.divf %97, %98 : vector<2x384xf32>
    %100 = vector.extract_strided_slice %93 {offsets = [0, 384], sizes = [2, 128], strides = [1, 1]} : vector<2x512xf32> to vector<2x128xf32>
    %101 = math.tanh %100 : vector<2x128xf32>
    %102 = vector.extract_strided_slice %99 {offsets = [0, 0], sizes = [2, 128], strides = [1, 1]} : vector<2x384xf32> to vector<2x128xf32>
    %103 = vector.extract_strided_slice %99 {offsets = [0, 128], sizes = [2, 128], strides = [1, 1]} : vector<2x384xf32> to vector<2x128xf32>
    %104 = vector.extract_strided_slice %99 {offsets = [0, 256], sizes = [2, 128], strides = [1, 1]} : vector<2x384xf32> to vector<2x128xf32>
    %105 = arith.mulf %103, %82 : vector<2x128xf32>
    %106 = arith.mulf %102, %101 : vector<2x128xf32>
    %107 = arith.addf %105, %106 : vector<2x128xf32>
    %108 = math.tanh %107 : vector<2x128xf32>
    %109 = arith.mulf %104, %108 : vector<2x128xf32>
    %110 = arith.index_cast %c3_i32 : i32 to index
    %c0_34 = arith.constant 0 : index
    %c0_35 = arith.constant 0 : index
    %111 = vector.load %arg8[%110, %c0_34, %c0_35] : memref<8x2x128xf32, #tpu.memory_space<vmem>>, vector<1x2x128xf32>
    %112 = vector.shape_cast %111 : vector<1x2x128xf32> to vector<2x128xf32>
    %113 = vector.shape_cast %109 : vector<2x128xf32> to vector<1x2x128xf32>
    tpu.vector_store %arg8[%110, %c0_34, %c0_35], %113 {strides = array<i32>} : memref<8x2x128xf32, #tpu.memory_space<vmem>>, vector<1x2x128xf32>,
    %c4_i32 = arith.constant 4 : i32
    %114 = arith.index_cast %c4_i32 : i32 to index
    %c0_36 = arith.constant 0 : index
    %c0_37 = arith.constant 0 : index
    %115 = vector.load %arg7[%114, %c0_36, %c0_37] : memref<8x2x512xf32, #tpu.memory_space<vmem>>, vector<1x2x512xf32>
    %116 = vector.shape_cast %115 : vector<1x2x512xf32> to vector<2x512xf32>
    %cst_38 = arith.constant dense<0.000000e+00> : vector<2x512xf32>
    %117 = tpu.matmul %109, %0, %cst_38 {dimension_numbers = #tpu.dot_dimension_numbers<[1], [0], [0], [1], [0, 0, 1, 1], [], []>} : vector<2x128xf32>, vector<128x512xf32>, vector<2x512xf32> -> vector<2x512xf32>
    %118 = arith.addf %116, %117 : vector<2x512xf32>
    %119 = vector.extract_strided_slice %118 {offsets = [0, 0], sizes = [2, 384], strides = [1, 1]} : vector<2x512xf32> to vector<2x384xf32>
    %120 = arith.negf %119 : vector<2x384xf32>
    %121 = math.exp %120 : vector<2x384xf32>
    %cst_39 = arith.constant 1.000000e+00 : f32
    %122 = vector.broadcast %cst_39 : f32 to vector<2x384xf32>
    %123 = arith.addf %122, %121 : vector<2x384xf32>
    %124 = arith.divf %122, %123 : vector<2x384xf32>
    %125 = vector.extract_strided_slice %118 {offsets = [0, 384], sizes = [2, 128], strides = [1, 1]} : vector<2x512xf32> to vector<2x128xf32>
    %126 = math.tanh %125 : vector<2x128xf32>
    %127 = vector.extract_strided_slice %124 {offsets = [0, 0], sizes = [2, 128], strides = [1, 1]} : vector<2x384xf32> to vector<2x128xf32>
    %128 = vector.extract_strided_slice %124 {offsets = [0, 128], sizes = [2, 128], strides = [1, 1]} : vector<2x384xf32> to vector<2x128xf32>
    %129 = vector.extract_strided_slice %124 {offsets = [0, 256], sizes = [2, 128], strides = [1, 1]} : vector<2x384xf32> to vector<2x128xf32>
    %130 = arith.mulf %128, %107 : vector<2x128xf32>
    %131 = arith.mulf %127, %126 : vector<2x128xf32>
    %132 = arith.addf %130, %131 : vector<2x128xf32>
    %133 = math.tanh %132 : vector<2x128xf32>
    %134 = arith.mulf %129, %133 : vector<2x128xf32>
    %135 = arith.index_cast %c4_i32 : i32 to index
    %c0_40 = arith.constant 0 : index
    %c0_41 = arith.constant 0 : index
    %136 = vector.load %arg8[%135, %c0_40, %c0_41] : memref<8x2x128xf32, #tpu.memory_space<vmem>>, vector<1x2x128xf32>
    %137 = vector.shape_cast %136 : vector<1x2x128xf32> to vector<2x128xf32>
    %138 = vector.shape_cast %134 : vector<2x128xf32> to vector<1x2x128xf32>
    tpu.vector_store %arg8[%135, %c0_40, %c0_41], %138 {strides = array<i32>} : memref<8x2x128xf32, #tpu.memory_space<vmem>>, vector<1x2x128xf32>,
    %c5_i32 = arith.constant 5 : i32
    %139 = arith.index_cast %c5_i32 : i32 to index
    %c0_42 = arith.constant 0 : index
    %c0_43 = arith.constant 0 : index
    %140 = vector.load %arg7[%139, %c0_42, %c0_43] : memref<8x2x512xf32, #tpu.memory_space<vmem>>, vector<1x2x512xf32>
    %141 = vector.shape_cast %140 : vector<1x2x512xf32> to vector<2x512xf32>
    %cst_44 = arith.constant dense<0.000000e+00> : vector<2x512xf32>
    %142 = tpu.matmul %134, %0, %cst_44 {dimension_numbers = #tpu.dot_dimension_numbers<[1], [0], [0], [1], [0, 0, 1, 1], [], []>} : vector<2x128xf32>, vector<128x512xf32>, vector<2x512xf32> -> vector<2x512xf32>
    %143 = arith.addf %141, %142 : vector<2x512xf32>
    %144 = vector.extract_strided_slice %143 {offsets = [0, 0], sizes = [2, 384], strides = [1, 1]} : vector<2x512xf32> to vector<2x384xf32>
    %145 = arith.negf %144 : vector<2x384xf32>
    %146 = math.exp %145 : vector<2x384xf32>
    %cst_45 = arith.constant 1.000000e+00 : f32
    %147 = vector.broadcast %cst_45 : f32 to vector<2x384xf32>
    %148 = arith.addf %147, %146 : vector<2x384xf32>
    %149 = arith.divf %147, %148 : vector<2x384xf32>
    %150 = vector.extract_strided_slice %143 {offsets = [0, 384], sizes = [2, 128], strides = [1, 1]} : vector<2x512xf32> to vector<2x128xf32>
    %151 = math.tanh %150 : vector<2x128xf32>
    %152 = vector.extract_strided_slice %149 {offsets = [0, 0], sizes = [2, 128], strides = [1, 1]} : vector<2x384xf32> to vector<2x128xf32>
    %153 = vector.extract_strided_slice %149 {offsets = [0, 128], sizes = [2, 128], strides = [1, 1]} : vector<2x384xf32> to vector<2x128xf32>
    %154 = vector.extract_strided_slice %149 {offsets = [0, 256], sizes = [2, 128], strides = [1, 1]} : vector<2x384xf32> to vector<2x128xf32>
    %155 = arith.mulf %153, %132 : vector<2x128xf32>
    %156 = arith.mulf %152, %151 : vector<2x128xf32>
    %157 = arith.addf %155, %156 : vector<2x128xf32>
    %158 = math.tanh %157 : vector<2x128xf32>
    %159 = arith.mulf %154, %158 : vector<2x128xf32>
    %160 = arith.index_cast %c5_i32 : i32 to index
    %c0_46 = arith.constant 0 : index
    %c0_47 = arith.constant 0 : index
    %161 = vector.load %arg8[%160, %c0_46, %c0_47] : memref<8x2x128xf32, #tpu.memory_space<vmem>>, vector<1x2x128xf32>
    %162 = vector.shape_cast %161 : vector<1x2x128xf32> to vector<2x128xf32>
    %163 = vector.shape_cast %159 : vector<2x128xf32> to vector<1x2x128xf32>
    tpu.vector_store %arg8[%160, %c0_46, %c0_47], %163 {strides = array<i32>} : memref<8x2x128xf32, #tpu.memory_space<vmem>>, vector<1x2x128xf32>,
    %c6_i32 = arith.constant 6 : i32
    %164 = arith.index_cast %c6_i32 : i32 to index
    %c0_48 = arith.constant 0 : index
    %c0_49 = arith.constant 0 : index
    %165 = vector.load %arg7[%164, %c0_48, %c0_49] : memref<8x2x512xf32, #tpu.memory_space<vmem>>, vector<1x2x512xf32>
    %166 = vector.shape_cast %165 : vector<1x2x512xf32> to vector<2x512xf32>
    %cst_50 = arith.constant dense<0.000000e+00> : vector<2x512xf32>
    %167 = tpu.matmul %159, %0, %cst_50 {dimension_numbers = #tpu.dot_dimension_numbers<[1], [0], [0], [1], [0, 0, 1, 1], [], []>} : vector<2x128xf32>, vector<128x512xf32>, vector<2x512xf32> -> vector<2x512xf32>
    %168 = arith.addf %166, %167 : vector<2x512xf32>
    %169 = vector.extract_strided_slice %168 {offsets = [0, 0], sizes = [2, 384], strides = [1, 1]} : vector<2x512xf32> to vector<2x384xf32>
    %170 = arith.negf %169 : vector<2x384xf32>
    %171 = math.exp %170 : vector<2x384xf32>
    %cst_51 = arith.constant 1.000000e+00 : f32
    %172 = vector.broadcast %cst_51 : f32 to vector<2x384xf32>
    %173 = arith.addf %172, %171 : vector<2x384xf32>
    %174 = arith.divf %172, %173 : vector<2x384xf32>
    %175 = vector.extract_strided_slice %168 {offsets = [0, 384], sizes = [2, 128], strides = [1, 1]} : vector<2x512xf32> to vector<2x128xf32>
    %176 = math.tanh %175 : vector<2x128xf32>
    %177 = vector.extract_strided_slice %174 {offsets = [0, 0], sizes = [2, 128], strides = [1, 1]} : vector<2x384xf32> to vector<2x128xf32>
    %178 = vector.extract_strided_slice %174 {offsets = [0, 128], sizes = [2, 128], strides = [1, 1]} : vector<2x384xf32> to vector<2x128xf32>
    %179 = vector.extract_strided_slice %174 {offsets = [0, 256], sizes = [2, 128], strides = [1, 1]} : vector<2x384xf32> to vector<2x128xf32>
    %180 = arith.mulf %178, %157 : vector<2x128xf32>
    %181 = arith.mulf %177, %176 : vector<2x128xf32>
    %182 = arith.addf %180, %181 : vector<2x128xf32>
    %183 = math.tanh %182 : vector<2x128xf32>
    %184 = arith.mulf %179, %183 : vector<2x128xf32>
    %185 = arith.index_cast %c6_i32 : i32 to index
    %c0_52 = arith.constant 0 : index
    %c0_53 = arith.constant 0 : index
    %186 = vector.load %arg8[%185, %c0_52, %c0_53] : memref<8x2x128xf32, #tpu.memory_space<vmem>>, vector<1x2x128xf32>
    %187 = vector.shape_cast %186 : vector<1x2x128xf32> to vector<2x128xf32>
    %188 = vector.shape_cast %184 : vector<2x128xf32> to vector<1x2x128xf32>
    tpu.vector_store %arg8[%185, %c0_52, %c0_53], %188 {strides = array<i32>} : memref<8x2x128xf32, #tpu.memory_space<vmem>>, vector<1x2x128xf32>,
    %c7_i32 = arith.constant 7 : i32
    %189 = arith.index_cast %c7_i32 : i32 to index
    %c0_54 = arith.constant 0 : index
    %c0_55 = arith.constant 0 : index
    %190 = vector.load %arg7[%189, %c0_54, %c0_55] : memref<8x2x512xf32, #tpu.memory_space<vmem>>, vector<1x2x512xf32>
    %191 = vector.shape_cast %190 : vector<1x2x512xf32> to vector<2x512xf32>
    %cst_56 = arith.constant dense<0.000000e+00> : vector<2x512xf32>
    %192 = tpu.matmul %184, %0, %cst_56 {dimension_numbers = #tpu.dot_dimension_numbers<[1], [0], [0], [1], [0, 0, 1, 1], [], []>} : vector<2x128xf32>, vector<128x512xf32>, vector<2x512xf32> -> vector<2x512xf32>
    %193 = arith.addf %191, %192 : vector<2x512xf32>
    %194 = vector.extract_strided_slice %193 {offsets = [0, 0], sizes = [2, 384], strides = [1, 1]} : vector<2x512xf32> to vector<2x384xf32>
    %195 = arith.negf %194 : vector<2x384xf32>
    %196 = math.exp %195 : vector<2x384xf32>
    %cst_57 = arith.constant 1.000000e+00 : f32
    %197 = vector.broadcast %cst_57 : f32 to vector<2x384xf32>
    %198 = arith.addf %197, %196 : vector<2x384xf32>
    %199 = arith.divf %197, %198 : vector<2x384xf32>
    %200 = vector.extract_strided_slice %193 {offsets = [0, 384], sizes = [2, 128], strides = [1, 1]} : vector<2x512xf32> to vector<2x128xf32>
    %201 = math.tanh %200 : vector<2x128xf32>
    %202 = vector.extract_strided_slice %199 {offsets = [0, 0], sizes = [2, 128], strides = [1, 1]} : vector<2x384xf32> to vector<2x128xf32>
    %203 = vector.extract_strided_slice %199 {offsets = [0, 128], sizes = [2, 128], strides = [1, 1]} : vector<2x384xf32> to vector<2x128xf32>
    %204 = vector.extract_strided_slice %199 {offsets = [0, 256], sizes = [2, 128], strides = [1, 1]} : vector<2x384xf32> to vector<2x128xf32>
    %205 = arith.mulf %203, %182 : vector<2x128xf32>
    %206 = arith.mulf %202, %201 : vector<2x128xf32>
    %207 = arith.addf %205, %206 : vector<2x128xf32>
    %208 = math.tanh %207 : vector<2x128xf32>
    %209 = arith.mulf %204, %208 : vector<2x128xf32>
    %210 = arith.index_cast %c7_i32 : i32 to index
    %c0_58 = arith.constant 0 : index
    %c0_59 = arith.constant 0 : index
    %211 = vector.load %arg8[%210, %c0_58, %c0_59] : memref<8x2x128xf32, #tpu.memory_space<vmem>>, vector<1x2x128xf32>
    %212 = vector.shape_cast %211 : vector<1x2x128xf32> to vector<2x128xf32>
    %213 = vector.shape_cast %209 : vector<2x128xf32> to vector<1x2x128xf32>
    tpu.vector_store %arg8[%210, %c0_58, %c0_59], %213 {strides = array<i32>} : memref<8x2x128xf32, #tpu.memory_space<vmem>>, vector<1x2x128xf32>,
    %c8_i32 = arith.constant 8 : i32
    %c0_60 = arith.constant 0 : index
    %c0_61 = arith.constant 0 : index
    %c0_62 = arith.constant 0 : index
    %214 = vector.load %arg8[%c0_60, %c0_61, %c0_62] : memref<8x2x128xf32, #tpu.memory_space<vmem>>, vector<8x2x128xf32>
    %c0_63 = arith.constant 0 : index
    %c0_64 = arith.constant 0 : index
    %215 = vector.load %arg4[%c0_63, %c0_64] : memref<1x128xf32, #tpu.memory_space<vmem>>, vector<1x128xf32>
    %216 = vector.shape_cast %215 : vector<1x128xf32> to vector<1x1x128xf32>
    %217 = vector.broadcast %216 : vector<1x1x128xf32> to vector<8x2x128xf32>
    %218 = arith.mulf %214, %217 : vector<8x2x128xf32>
    %cst_65 = arith.constant dense<0.000000e+00> : vector<8x2xf32>
    %219 = vector.multi_reduction <add>, %218, %cst_65 [2] : vector<8x2x128xf32> to vector<8x2xf32>
    %220 = vector.shape_cast %219 : vector<8x2xf32> to vector<8x2x1xf32>
    %c0_66 = arith.constant 0 : index
    %c0_67 = arith.constant 0 : index
    %221 = vector.load %arg5[%c0_66, %c0_67] : memref<1x1xf32, #tpu.memory_space<vmem>>, vector<1x1xf32>
    %222 = vector.shape_cast %221 : vector<1x1xf32> to vector<1x1x1xf32>
    %223 = vector.broadcast %222 : vector<1x1x1xf32> to vector<8x2x1xf32>
    %224 = arith.addf %220, %223 : vector<8x2x1xf32>
    %c0_68 = arith.constant 0 : index
    %c0_69 = arith.constant 0 : index
    %c0_70 = arith.constant 0 : index
    %225 = vector.load %arg6[%c0_68, %c0_69, %c0_70] : memref<8x2x1xf32, #tpu.memory_space<vmem>>, vector<8x2x1xf32>
    tpu.vector_store %arg6[%c0_68, %c0_69, %c0_70], %224 {strides = array<i32>} : memref<8x2x1xf32, #tpu.memory_space<vmem>>, vector<8x2x1xf32>,
    return
  }
}

</mosaic_0001>

<bundles_post_ra>
// kernel: tpu_custom_call.1
= control target key start
LH: loop header
LB: loop body
LE: loop exit
PB: predicated region body
PF: predicated region fallthrough
CT: control target
= control target key end

     0   :  { %s3305_s0 = inlined_call_operand.vmem [shape: f32[8,2,1], index: 0, kind: input, shape index: {}]   ;;  %s3306_s1 = inlined_call_operand.vmem [shape: f32[1,512], index: 1, kind: input, shape index: {}]   ;;  %s3307_s2 = inlined_call_operand.hbm [shape: f32[128,512], index: 2, kind: input, shape index: {}]   ;;  %s3308_s3 = inlined_call_operand.vmem [shape: f32[1,512], index: 3, kind: input, shape index: {}]   ;;  %s3309_s4 = inlined_call_operand.vmem [shape: f32[1,128], index: 4, kind: input, shape index: {}]   ;;  %s3310_s5 = inlined_call_operand.<no memory space> [shape: f32[1,1], index: 5, kind: input, shape index: {}]   ;;  %s3311_s6 = inlined_call_operand.vmem [shape: f32[8,2,1], index: 6, kind: output, shape index: {}]  }
   0x1   :  { %v11_v0 = vstv %s3310_s5 }
   0x2   :  { %12 = vst [vmem:[#allocation4] sm:$0x1] %v11_v0 }
   0x3   :  { %13 = vsyncpa [#allocation6], 0  ;;  %s2650_s23 = smov [#allocation5]   ;;  %s2626_s27 = scalar_lea.hbm %s3307_s2, 8192 }
   0x4   :  { %s23_s24 = sshll.u32 %s2650_s23, 4  ;;  %p2627_p0 = scmp.ne.s32.totalorder %s3307_s2, %s2626_s27  ;;  %s24_s24 = int_to_ptr.vmem [resolvable:$true] %s23_s24 }
   0x5   :  { %p2630_p1 = scmp.lt.u32.totalorder %s2626_s27, %s3307_s2 }
   0x7   :  { %p2632_p2 = pnand %p2630_p1, %p2627_p0 }
   0x9   :  { %2635 = shalt.err (!%p2632_p2)
}
   0xa   :  { %s2636_s5 = scalar_lea.vmem %s24_s24, 8192  ;;  %p2641_p4 = scmp.lt.s32.totalorder %s24_s24, %s24_s24 }
   0xb   :  { %p2637_p3 = scmp.ne.s32.totalorder %s24_s24, %s2636_s5  ;;  %p2642_p5 = scmp.lt.s32.totalorder %s2636_s5, %s2636_s5 }
   0xd   :  { %p2643_p6 = por %p2642_p5, %p2641_p4 }
   0xf   :  { %p2644_p7 = pnand %p2643_p6, %p2637_p3 }
  0x11   :  { %2647 = shalt.err (!%p2644_p7)
}
  0x12   :  { %s2651_s8 = smov 512   ;;  %s2652_s9 = smov 32  }
  0x13   :  { %29 = dma.hbm_to_vmem [thread:$0]  %s3307_s2, 8192, %s24_s24, [#allocation6], %s2651_s8, %s2651_s8, %s2652_s9  }
  0x14   :  { %2648 = dma.done.wait [#allocation6], 8192  }
  0x15   :  { %2649 = vsyncadd [#allocation6], 4294959104  ;;  %v3312_v1 = vmov 0.0   ;;  %v2654_v2 = vmov 0   ;;  %v40_v3 = vld [vmem:[#allocation5 + $0x8] sm:$0xff]  ;;  %v42_v5 = vld [vmem:[#allocation5 + $0x18] sm:$0xff] }
  0x16   :  { %508 = vmatprep.mubr.f32.mxu0 %v3312_v1  ;;  %579 = vmatprep.mubr.f32.mxu1 %v3312_v1  ;;  %v44_v4 = vld [vmem:[#allocation5 + $0x28] sm:$0xff]  ;;  %v46_v7 = vld [vmem:[#allocation5 + $0x38] sm:$0xff]  ;;  %v39_v8 = vld [vmem:[#allocation5] sm:$0xff]  ;;  %vm1976_vm0 = vcmask 1041408   ;;  %vm2016_vm1 = vcmask 1024  }
  0x17   :  { %2558 = vset.pattern.permute.xlu0 %v2654_v2  ;;  %2559 = vset.pattern.permute.xlu1 %v2654_v2  ;;  %v2708_v6 = vpack.c.bf16 %v44_v4, %v40_v3  ;;  %v43_v9 = vld [vmem:[#allocation5 + $0x20] sm:$0xff]  ;;  %v2710_v10 = vpack.c.bf16 %v46_v7, %v42_v5  ;;  %v41_v12 = vld [vmem:[#allocation5 + $0x10] sm:$0xff]  ;;  %v48_v14 = vld [vmem:[#allocation5 + $0x48] sm:$0xff] }
  0x18   :  { %v2712_v11 = vpack.c.bf16 %v43_v9, %v39_v8  ;;  %v45_v13 = vld [vmem:[#allocation5 + $0x30] sm:$0xff]  ;;  %v52_v16 = vld [vmem:[#allocation5 + $0x68] sm:$0xff]  ;;  %v50_v17 = vld [vmem:[#allocation5 + $0x58] sm:$0xff] }
  0x19   :  { %2041 = vmatprep.subr.bf16.mxu0 %v2708_v6  ;;  %v2715_v15 = vpack.c.bf16 %v45_v13, %v41_v12  ;;  %v54_v18 = vld [vmem:[#allocation5 + $0x78] sm:$0xff]  ;;  %2073 = vmatprep.subr.bf16.mxu1 %v2710_v10  ;;  %v2719_v19 = vpack.c.bf16 %v52_v16, %v48_v14  ;;  %v47_v21 = vld [vmem:[#allocation5 + $0x40] sm:$0xff]  ;;  %v49_v23 = vld [vmem:[#allocation5 + $0x50] sm:$0xff] }
  0x1a   :  { %2043 = vmatpush1.bf16.msra.mxu0 %v2712_v11  ;;  %v2721_v20 = vpack.c.bf16 %v54_v18, %v50_v17  ;;  %v51_v22 = vld [vmem:[#allocation5 + $0x60] sm:$0xff]  ;;  %v53_v25 = vld [vmem:[#allocation5 + $0x70] sm:$0xff]  ;;  %v56_v26 = vld [vmem:[#allocation5 + $0x88] sm:$0xff] }
  0x1b   :  { %2075 = vmatpush1.bf16.msra.mxu1 %v2715_v15  ;;  %v2724_v24 = vpack.c.bf16 %v51_v22, %v47_v21  ;;  %v60_v27 = vld [vmem:[#allocation5 + $0xa8] sm:$0xff]  ;;  %2045 = vmatprep.subr.bf16.mxu0 %v2719_v19  ;;  %v2728_v28 = vpack.c.bf16 %v53_v25, %v49_v23  ;;  %v58_v30 = vld [vmem:[#allocation5 + $0x98] sm:$0xff]  ;;  %v55_v32 = vld [vmem:[#allocation5 + $0x80] sm:$0xff] }
  0x1c   :  { %2077 = vmatprep.subr.bf16.mxu1 %v2721_v20  ;;  %v2730_v29 = vpack.c.bf16 %v60_v27, %v56_v26  ;;  %v62_v31 = vld [vmem:[#allocation5 + $0xb8] sm:$0xff]  ;;  %v59_v34 = vld [vmem:[#allocation5 + $0xa0] sm:$0xff]  ;;  %v57_v35 = vld [vmem:[#allocation5 + $0x90] sm:$0xff] }
  0x1d   :  { %v2732_v33 = vpack.c.bf16 %v62_v31, %v58_v30  ;;  %v61_v36 = vld [vmem:[#allocation5 + $0xb0] sm:$0xff]  ;;  %v2735_v37 = vpack.c.bf16 %v59_v34, %v55_v32  ;;  %v64_v38 = vld [vmem:[#allocation5 + $0xc8] sm:$0xff]  ;;  %v66_v40 = vld [vmem:[#allocation5 + $0xd8] sm:$0xff] }
  0x1e   :  { %2047 = vmatpush1.bf16.msra.mxu0 %v2724_v24  ;;  %v68_v39 = vld [vmem:[#allocation5 + $0xe8] sm:$0xff]  ;;  %v2739_v41 = vpack.c.bf16 %v61_v36, %v57_v35  ;;  %v70_v43 = vld [vmem:[#allocation5 + $0xf8] sm:$0xff]  ;;  %v63_v44 = vld [vmem:[#allocation5 + $0xc0] sm:$0xff] }
  0x1f   :  { %2079 = vmatpush1.bf16.msra.mxu1 %v2728_v28  ;;  %2049 = vmatprep.subr.bf16.mxu0 %v2730_v29  ;;  %v2741_v42 = vpack.c.bf16 %v68_v39, %v64_v38  ;;  %v67_v45 = vld [vmem:[#allocation5 + $0xe0] sm:$0xff]  ;;  %v2744_v46 = vpack.c.bf16 %v70_v43, %v66_v40  ;;  %v65_v47 = vld [vmem:[#allocation5 + $0xd0] sm:$0xff]  ;;  %v72_v49 = vld [vmem:[#allocation5 + $0x108] sm:$0xff] }
  0x20   :  { %2081 = vmatprep.subr.bf16.mxu1 %v2732_v33  ;;  %v69_v48 = vld [vmem:[#allocation5 + $0xf0] sm:$0xff]  ;;  %v76_v50 = vld [vmem:[#allocation5 + $0x128] sm:$0xff]  ;;  %v74_v51 = vld [vmem:[#allocation5 + $0x118] sm:$0xff]  ;;  %v2747_v53 = vpack.c.bf16 %v67_v45, %v63_v44 }
  0x21   :  { %v78_v52 = vld [vmem:[#allocation5 + $0x138] sm:$0xff]  ;;  %v2751_v54 = vpack.c.bf16 %v69_v48, %v65_v47  ;;  %v2753_v55 = vpack.c.bf16 %v76_v50, %v72_v49  ;;  %v71_v56 = vld [vmem:[#allocation5 + $0x100] sm:$0xff]  ;;  %v73_v58 = vld [vmem:[#allocation5 + $0x110] sm:$0xff] }
  0x22   :  { %2051 = vmatpush1.bf16.msra.mxu0 %v2735_v37  ;;  %v75_v57 = vld [vmem:[#allocation5 + $0x120] sm:$0xff]  ;;  %v2756_v59 = vpack.c.bf16 %v78_v52, %v74_v51  ;;  %v77_v60 = vld [vmem:[#allocation5 + $0x130] sm:$0xff]  ;;  %v80_v61 = vld [vmem:[#allocation5 + $0x148] sm:$0xff] }
  0x23   :  { %2083 = vmatpush1.bf16.msra.mxu1 %v2739_v41  ;;  %2053 = vmatprep.subr.bf16.mxu0 %v2741_v42  ;;  %v84_v62 = vld [vmem:[#allocation5 + $0x168] sm:$0xff]  ;;  %v82_v63 = vld [vmem:[#allocation5 + $0x158] sm:$0xff]  ;;  %v2759_v2 = vpack.c.bf16 %v75_v57, %v71_v56  ;;  %v2763_v3 = vpack.c.bf16 %v77_v60, %v73_v58  ;;  %v79_v5 = vld [vmem:[#allocation5 + $0x140] sm:$0xff]  ;;  %v153_v57 = vlaneseq }
  0x24   :  { %2085 = vmatprep.subr.bf16.mxu1 %v2744_v46  ;;  %v86_v0 = vld [vmem:[#allocation5 + $0x178] sm:$0xff]  ;;  %v2765_v4 = vpack.c.bf16 %v84_v62, %v80_v61  ;;  %v83_v7 = vld [vmem:[#allocation5 + $0x160] sm:$0xff]  ;;  %v81_v8 = vld [vmem:[#allocation5 + $0x150] sm:$0xff] }
  0x25   :  { %v2768_v9 = vpack.c.bf16 %v86_v0, %v82_v63  ;;  %v85_v12 = vld [vmem:[#allocation5 + $0x170] sm:$0xff]  ;;  %v88_v13 = vld [vmem:[#allocation5 + $0x188] sm:$0xff]  ;;  %v90_v16 = vld [vmem:[#allocation5 + $0x198] sm:$0xff]  ;;  %v2771_v18 = vpack.c.bf16 %v83_v7, %v79_v5  ;;  %v154_v58 = vshrl.u32 %v153_v57, 7 }
  0x26   :  { %2055 = vmatpush1.bf16.msra.mxu0 %v2747_v53  ;;  %v92_v14 = vld [vmem:[#allocation5 + $0x1a8] sm:$0xff]  ;;  %v94_v17 = vld [vmem:[#allocation5 + $0x1b8] sm:$0xff]  ;;  %v87_v21 = vld [vmem:[#allocation5 + $0x180] sm:$0xff]  ;;  %v2775_v22 = vpack.c.bf16 %v85_v12, %v81_v8 }
  0x27   :  { %2087 = vmatpush1.bf16.msra.mxu1 %v2751_v54  ;;  %2057 = vmatprep.subr.bf16.mxu0 %v2753_v55  ;;  %v2777_v23 = vpack.c.bf16 %v92_v14, %v88_v13  ;;  %v91_v25 = vld [vmem:[#allocation5 + $0x1a0] sm:$0xff]  ;;  %v89_v26 = vld [vmem:[#allocation5 + $0x190] sm:$0xff]  ;;  %v2783_v30 = vpack.c.bf16 %v94_v17, %v90_v16  ;;  %v96_v32 = vld [vmem:[#allocation5 + $0x1c8] sm:$0xff]  ;;  %v155_v60 = vsub.s32 0, %v154_v58  ;;  %v159_v61 = vsub.s32 1, %v154_v58 }
  0x28   :  { %2089 = vmatprep.subr.bf16.mxu1 %v2756_v59  ;;  %v103_v27 = vld [vmem:[%s3305_s0] sm:$0x3]  ;;  %v98_v35 = vld [vmem:[#allocation5 + $0x1d8] sm:$0xff]  ;;  %v104_v38 = vld [vmem:[%s3305_s0 + $0x2] sm:$0x3]  ;;  %v2789_v39 = vpack.c.bf16 %v91_v25, %v87_v21  ;;  %v163_v62 = vsub.s32 2, %v154_v58 }
  0x29   :  { %v93_v31 = vld [vmem:[#allocation5 + $0x1b0] sm:$0xff]  ;;  %v100_v34 = vld [vmem:[#allocation5 + $0x1e8] sm:$0xff]  ;;  %114 = vperm.xlu0 %2558, %v103_v27   ;;  %v102_v36 = vld [vmem:[#allocation5 + $0x1f8] sm:$0xff]  ;;  %v167_v63 = vsub.s32 3, %v154_v58  ;;  %v2655_v14 = vmov 1983009808  }
  0x2a   :  { %2059 = vmatpush1.bf16.msra.mxu0 %v2759_v2  ;;  %v2793_v40 = vpack.c.bf16 %v93_v31, %v89_v26  ;;  %v2795_v43 = vpack.c.bf16 %v100_v34, %v96_v32  ;;  %v95_v44 = vld [vmem:[#allocation5 + $0x1c0] sm:$0xff]  ;;  %v2798_v47 = vpack.c.bf16 %v102_v36, %v98_v35  ;;  %v97_v48 = vld [vmem:[#allocation5 + $0x1d0] sm:$0xff]  ;;  %v109_v56 = vld [vmem:[%s3305_s0 + $0xc] sm:$0x3]  ;;  %v294_v16 = vunpack.c.l.s4 %v2655_v14 }
  0x2b   :  { %2091 = vmatpush1.bf16.msra.mxu1 %v2763_v3  ;;  %2061 = vmatprep.subr.bf16.mxu0 %v2765_v4  ;;  %v99_v45 = vld [vmem:[#allocation5 + $0x1e0] sm:$0xff]  ;;  %v101_v49 = vld [vmem:[#allocation5 + $0x1f0] sm:$0xff] }
  0x2c   :  { %2093 = vmatprep.subr.bf16.mxu1 %v2768_v9  ;;  %v107_v50 = vld [vmem:[%s3305_s0 + $0x8] sm:$0x3]  ;;  %v2804_v51 = vpack.c.bf16 %v99_v45, %v95_v44  ;;  %v2808_v52 = vpack.c.bf16 %v101_v49, %v97_v48  ;;  %v111_v0 = vld [vmem:[%s3306_s1] sm:$0xf]  ;;  %v295_v36 = vunpack.c.0.s8 %v294_v16 }
  0x2d   :  { %119 = vperm.xlu0 %2558, %v104_v38   ;;  %v2857_v5 = vrot.slane %v111_v0, %v155_v60  ;;  %v2859_v7 = vrot.slane %v111_v0, %v159_v61  ;;  %v2861_v8 = vrot.slane %v111_v0, %v163_v62  ;;  %v2863_v12 = vrot.slane %v111_v0, %v167_v63  ;;  %v205_v13 = vld [vmem:[%s3308_s3] sm:$0xf] }
  0x2e   :  { %2063 = vmatpush1.bf16.msra.mxu0 %v2771_v18  ;;  %v2868_v17 = vrot.slane %v205_v13, %v155_v60  ;;  %v2870_v21 = vrot.slane %v205_v13, %v159_v61  ;;  %v2872_v25 = vrot.slane %v205_v13, %v163_v62  ;;  %v2874_v26 = vrot.slane %v205_v13, %v167_v63 }
  0x2f   :  { %2095 = vmatpush1.bf16.msra.mxu1 %v2775_v22  ;;  %2065 = vmatprep.subr.bf16.mxu0 %v2777_v23  ;;  %v2884_v49 = vsub.s32 %v295_v36, %v154_v58 }
  0x30   :  { %2097 = vmatprep.subr.bf16.mxu1 %v2783_v30  ;;  %3324 = vst [vmem:[#allocation8_spill] sm:$0xff] %v2868_v17  ;;  %3325 = vst [vmem:[#allocation9_spill] sm:$0xff] %v2872_v25 }
  0x31   :  { %134 = vperm.xlu0 %2558, %v107_v50   ;;  %3326 = vst [vmem:[#allocation10_spill] sm:$0xff] %v2874_v26 }
  0x32   :  { %2067 = vmatpush1.bf16.msra.mxu0 %v2789_v39 }
  0x33   :  { %2099 = vmatpush1.bf16.msra.mxu1 %v2793_v40  ;;  %2069 = vmatprep.subr.bf16.mxu0 %v2795_v43 }
  0x34   :  { %2101 = vmatprep.subr.bf16.mxu1 %v2798_v47 }
  0x35   :  { %144 = vperm.xlu0 %2558, %v109_v56  }
  0x36   :  { %2071 = vmatpush1.bf16.msra.mxu0 %v2804_v51 }
  0x37   :  { %2103 = vmatpush1.bf16.msra.mxu1 %v2808_v52  ;;  %2105 = vmatprep.subr.bf16.mxu0 %v2708_v6 }
  0x38   :  { %2137 = vmatprep.subr.bf16.mxu1 %v2710_v10 }
  0x39   :  { %509 = vmatmul.mubr.f32.vlgmr.msra.gmra.mrb[0].mxu0 %v3312_v1 }
  0x3a   :  { %580 = vmatmul.mubr.f32.vlgmr.msra.gmra.mrb[0].mxu1 %v3312_v1  ;;  %2107 = vmatpush1.bf16.msra.mxu0 %v2712_v11 }
  0x3b   :  { %2139 = vmatpush1.bf16.msra.mxu1 %v2715_v15  ;;  %2109 = vmatprep.subr.bf16.mxu0 %v2719_v19 }
  0x3c   :  { %2141 = vmatprep.subr.bf16.mxu1 %v2721_v20  ;;  %696 = vmatprep.mubr.f32.mxu0 %v3312_v1 }
  0x3d   :  { %767 = vmatprep.mubr.f32.mxu1 %v3312_v1 }
  0x3e   :  { %2111 = vmatpush1.bf16.msra.mxu0 %v2724_v24 }
  0x3f   :  { %2143 = vmatpush1.bf16.msra.mxu1 %v2728_v28  ;;  %2113 = vmatprep.subr.bf16.mxu0 %v2730_v29 }
  0x40   :  { %2145 = vmatprep.subr.bf16.mxu1 %v2732_v33 }
  0x42   :  { %2115 = vmatpush1.bf16.msra.mxu0 %v2735_v37 }
  0x43   :  { %2147 = vmatpush1.bf16.msra.mxu1 %v2739_v41  ;;  %2117 = vmatprep.subr.bf16.mxu0 %v2741_v42 }
  0x44   :  { %2149 = vmatprep.subr.bf16.mxu1 %v2744_v46 }
  0x46   :  { %2119 = vmatpush1.bf16.msra.mxu0 %v2747_v53 }
  0x47   :  { %2151 = vmatpush1.bf16.msra.mxu1 %v2751_v54  ;;  %2121 = vmatprep.subr.bf16.mxu0 %v2753_v55 }
  0x48   :  { %2153 = vmatprep.subr.bf16.mxu1 %v2756_v59 }
  0x4a   :  { %2123 = vmatpush1.bf16.msra.mxu0 %v2759_v2 }
  0x4b   :  { %2155 = vmatpush1.bf16.msra.mxu1 %v2763_v3  ;;  %2125 = vmatprep.subr.bf16.mxu0 %v2765_v4 }
  0x4c   :  { %2157 = vmatprep.subr.bf16.mxu1 %v2768_v9 }
  0x4e   :  { %2127 = vmatpush1.bf16.msra.mxu0 %v2771_v18 }
  0x4f   :  { %2159 = vmatpush1.bf16.msra.mxu1 %v2775_v22  ;;  %2129 = vmatprep.subr.bf16.mxu0 %v2777_v23 }
  0x50   :  { %2161 = vmatprep.subr.bf16.mxu1 %v2783_v30 }
  0x52   :  { %2131 = vmatpush1.bf16.msra.mxu0 %v2789_v39 }
  0x53   :  { %2163 = vmatpush1.bf16.msra.mxu1 %v2793_v40  ;;  %2133 = vmatprep.subr.bf16.mxu0 %v2795_v43 }
  0x54   :  { %2165 = vmatprep.subr.bf16.mxu1 %v2798_v47 }
  0x56   :  { %2135 = vmatpush1.bf16.msra.mxu0 %v2804_v51 }
  0x57   :  { %2167 = vmatpush1.bf16.msra.mxu1 %v2808_v52  ;;  %2169 = vmatprep.subr.bf16.mxu0 %v2708_v6 }
  0x58   :  { %2201 = vmatprep.subr.bf16.mxu1 %v2710_v10 }
  0xa8   :  { %v115_v27 = vpop.permute.xlu0 %114 }
  0xa9   :  { %v173_v31 = vmul.f32 %v2857_v5, %v115_v27  ;;  %v174_v32 = vmul.f32 %v2859_v7, %v115_v27  ;;  %v175_v34 = vmul.f32 %v2861_v8, %v115_v27  ;;  %v176_v35 = vmul.f32 %v2863_v12, %v115_v27 }
  0xab   :  { %v227_v38 = vadd.f32 %v2868_v17, %v173_v31  ;;  %v228_v44 = vadd.f32 %v2870_v21, %v174_v32  ;;  %v229_v45 = vadd.f32 %v2872_v25, %v175_v34  ;;  %v230_v48 = vadd.f32 %v2874_v26, %v176_v35 }
  0xad   :  { %v291_v50 = vcombine.low %v227_v38, %v228_v44  ;;  %v292_v56 = vcombine.low %v229_v45, %v230_v48 }
  0xaf   :  { %v299_v62 = vrot.slane %v291_v50, %v2884_v49  ;;  %v306_v63 = vrot.slane %v292_v56, %v2884_v49 }
  0xb1   :  { %v307_v27 = vcombine.low %v299_v62, %v306_v63  ;;  %v2902_v63 = vld [vmem:[%s3309_s4] ss:$0 sm:$0xff] }
 0x10c   :  { %v510_v57 = vpop.f32.mrb[0].mxu0 }
 0x10d   :  { %v581_v60 = vpop.f32.mrb[0].mxu1  ;;  %v512_v61 = vpop.f32.mrb[1].mxu0 }
 0x10e   :  { %v590_v0 = vcombine.low %v510_v57, %v512_v61  ;;  %v583_v13 = vpop.f32.mrb[1].mxu1 }
 0x10f   :  { %v591_v14 = vcombine.low %v581_v60, %v583_v13 }
 0x110   :  { %v598_v16 = vrot.slane %v590_v0, %v2884_v49 }
 0x111   :  { %v605_v31 = vrot.slane %v591_v14, %v2884_v49 }
 0x113   :  { %v606_v32 = vcombine.low %v598_v16, %v605_v31  ;;  %v105_v16 = vld [vmem:[%s3305_s0 + $0x4] sm:$0x3]  ;;  %v108_v31 = vld [vmem:[%s3305_s0 + $0xa] sm:$0x3] }
 0x114   :  { %124 = vperm.xlu1 %2559, %v105_v16  }
 0x115   :  { %v608_v58 = vadd.f32 %v606_v32, %v307_v27  ;;  %v106_v27 = vld [vmem:[%s3305_s0 + $0x6] sm:$0x3]  ;;  %v110_v32 = vld [vmem:[%s3305_s0 + $0xe] sm:$0x3] }
 0x117   :  { %v2030_v34 = vmul.f32 -1.442695, %v608_v58  ;;  %v616_v38 = vrot.slane %v608_v58, 6  ;;  %v120_v58 = vpop.permute.xlu0 %119 }
 0x118   :  { %129 = vperm.xlu1 %2559, %v106_v27  }
 0x119   :  { %2560 = vpow2.f32 %v2030_v34 }
 0x11b   :  { %v2946_v34 = vpop.permute.xlu0 %134 }
 0x11c   :  { %139 = vperm.xlu1 %2559, %v108_v31   ;;  %3327 = vst [vmem:[#allocation11_spill] sm:$0xff] %v2946_v34 }
 0x120   :  { %149 = vperm.xlu1 %2559, %v110_v32  }
 0x123   :  { %v2561_v35 = vpop.eup %2560 }
 0x124   :  { %v612_v36 = vadd.f32 1.0, %v2561_v35  ;;  %v2948_v35 = vpop.permute.xlu0 %144 }
 0x125   :  { %3328 = vst [vmem:[#allocation12_spill] sm:$0xff] %v2948_v35 }
 0x126   :  { %2562 = vrcp.f32 %v612_v36  ;;  %v2950_v36 = vld [vmem:[#allocation4] ss:$0 sm:$0xff] }
 0x127   :  { %2564 = vtanh.f32 %v616_v38 }
 0x130   :  { %v2563_v44 = vpop.eup %2562 }
 0x131   :  { %v620_v45 = vrot.slane %v2563_v44, 2  ;;  %v2565_v48 = vpop.eup %2564  ;;  %v626_v60 = vrot.slane %v2563_v44, 4 }
 0x132   :  { %v623_v50 = vmul.f32 %v2565_v48, %v2563_v44  ;;  %v178_v48 = vmul.f32 %v2859_v7, %v120_v58 }
 0x133   :  { %v622_v56 = vmul.f32 0.0, %v620_v45  ;;  %v177_v45 = vmul.f32 %v2857_v5, %v120_v58 }
 0x135   :  { %v2890_v57 = vadd.f32 %v623_v50, %v622_v56  ;;  %v179_v50 = vmul.f32 %v2861_v8, %v120_v58  ;;  %v180_v56 = vmul.f32 %v2863_v12, %v120_v58 }
 0x137   :  { %2566 = vtanh.f32 %v2890_v57 }
 0x141   :  { %v2567_v61 = vpop.eup %2566 }
 0x142   :  { %v628_v62 = vmul.f32 %v2567_v61, %v626_v60  ;;  %v231_v60 = vadd.f32 %v2868_v17, %v177_v45  ;;  %v232_v61 = vadd.f32 %v2870_v21, %v178_v48 }
 0x144   :  { %629 = vst [vmem:[#allocation3] sm:$0x3] %v628_v62  ;;  %697 = vmatmul.mubr.f32.vlgmr.msra.gmra.mrb[2].mxu0 %v628_v62  ;;  %768 = vmatmul.mubr.f32.vlgmr.msra.gmra.mrb[2].mxu1 %v628_v62  ;;  %v233_v62 = vadd.f32 %v2872_v25, %v179_v50 }
 0x145   :  { %2171 = vmatpush1.bf16.msra.mxu0 %v2712_v11  ;;  %2203 = vmatpush1.bf16.msra.mxu1 %v2715_v15 }
 0x146   :  { %2173 = vmatprep.subr.bf16.mxu0 %v2719_v19  ;;  %2205 = vmatprep.subr.bf16.mxu1 %v2721_v20 }
 0x147   :  { %885 = vmatprep.mubr.f32.mxu0 %v3312_v1  ;;  %956 = vmatprep.mubr.f32.mxu1 %v3312_v1 }
 0x149   :  { %2175 = vmatpush1.bf16.msra.mxu0 %v2724_v24  ;;  %2207 = vmatpush1.bf16.msra.mxu1 %v2728_v28 }
 0x14a   :  { %2177 = vmatprep.subr.bf16.mxu0 %v2730_v29  ;;  %2209 = vmatprep.subr.bf16.mxu1 %v2732_v33 }
 0x14b   :  { %v1953_v0 = vld [vmem:[#allocation3] sm:$0x3] }
 0x14c   :  { %v1968_v13 = vmul.f32 %v2902_v63, %v1953_v0  ;;  %v234_v0 = vadd.f32 %v2874_v26, %v180_v56 }
 0x14d   :  { %2179 = vmatpush1.bf16.msra.mxu0 %v2735_v37  ;;  %2211 = vmatpush1.bf16.msra.mxu1 %v2739_v41 }
 0x14e   :  { %v1977_v14 = vsel %vm1976_vm0, %v1968_v13, 0.0  ;;  %2181 = vmatprep.subr.bf16.mxu0 %v2741_v42  ;;  %2213 = vmatprep.subr.bf16.mxu1 %v2744_v46  ;;  %v308_v13 = vcombine.low %v231_v60, %v232_v61 }
 0x14f   :  { %1978 = vadd.xlane.f32.xlu0 %v1977_v14  ;;  %v309_v14 = vcombine.low %v233_v62, %v234_v0 }
 0x151   :  { %2183 = vmatpush1.bf16.msra.mxu0 %v2747_v53  ;;  %2215 = vmatpush1.bf16.msra.mxu1 %v2751_v54  ;;  %v323_v1 = vrot.slane %v309_v14, %v2884_v49 }
 0x152   :  { %2185 = vmatprep.subr.bf16.mxu0 %v2753_v55  ;;  %2217 = vmatprep.subr.bf16.mxu1 %v2756_v59 }
 0x155   :  { %2187 = vmatpush1.bf16.msra.mxu0 %v2759_v2  ;;  %2219 = vmatpush1.bf16.msra.mxu1 %v2763_v3 }
 0x156   :  { %2189 = vmatprep.subr.bf16.mxu0 %v2765_v4  ;;  %2221 = vmatprep.subr.bf16.mxu1 %v2768_v9 }
 0x159   :  { %2191 = vmatpush1.bf16.msra.mxu0 %v2771_v18  ;;  %2223 = vmatpush1.bf16.msra.mxu1 %v2775_v22 }
 0x15a   :  { %2193 = vmatprep.subr.bf16.mxu0 %v2777_v23  ;;  %2225 = vmatprep.subr.bf16.mxu1 %v2783_v30 }
 0x15d   :  { %2195 = vmatpush1.bf16.msra.mxu0 %v2789_v39  ;;  %2227 = vmatpush1.bf16.msra.mxu1 %v2793_v40 }
 0x15e   :  { %2197 = vmatprep.subr.bf16.mxu0 %v2795_v43  ;;  %2229 = vmatprep.subr.bf16.mxu1 %v2798_v47 }
 0x161   :  { %2199 = vmatpush1.bf16.msra.mxu0 %v2804_v51  ;;  %2231 = vmatpush1.bf16.msra.mxu1 %v2808_v52 }
 0x162   :  { %2233 = vmatprep.subr.bf16.mxu0 %v2708_v6  ;;  %2265 = vmatprep.subr.bf16.mxu1 %v2710_v10 }
 0x1dc   :  { %v1979_v38 = vpop.xlane.xlu0 %1978 }
 0x1dd   :  { %v2008_v44 = vadd.f32 %v2950_v36, %v1979_v38 }
 0x1df   :  { %2017 = vst.msk [vmem:[%s3311_s6] sm:$0x3] %vm2016_vm1, %v2008_v44  ;;  %v316_v44 = vrot.slane %v308_v13, %v2884_v49 }
 0x1e1   :  { %v324_v35 = vcombine.low %v316_v44, %v323_v1 }
 0x217   :  { %v698_v16 = vpop.f32.mrb[2].mxu0  ;;  %v769_v27 = vpop.f32.mrb[2].mxu1 }
 0x218   :  { %v700_v31 = vpop.f32.mrb[3].mxu0  ;;  %v771_v32 = vpop.f32.mrb[3].mxu1 }
 0x219   :  { %v778_v38 = vcombine.low %v698_v16, %v700_v31  ;;  %v779_v58 = vcombine.low %v769_v27, %v771_v32 }
 0x21b   :  { %v786_v45 = vrot.slane %v778_v38, %v2884_v49  ;;  %v793_v48 = vrot.slane %v779_v58, %v2884_v49  ;;  %v125_v58 = vpop.permute.xlu1 %124 }
 0x21d   :  { %v794_v50 = vcombine.low %v786_v45, %v793_v48 }
 0x21f   :  { %v796_v34 = vadd.f32 %v794_v50, %v324_v35  ;;  %v3009_v45 = vpop.permute.xlu1 %129 }
 0x221   :  { %v2031_v56 = vmul.f32 -1.442695, %v796_v34  ;;  %v804_v62 = vrot.slane %v796_v34, 6  ;;  %v3329_v34 = vmov 0.0  }
 0x223   :  { %2568 = vpow2.f32 %v2031_v56  ;;  %v3011_v48 = vpop.permute.xlu1 %139 }
 0x224   :  { %3330 = vst [vmem:[#allocation13_spill] sm:$0xff] %v3011_v48 }
 0x227   :  { %v3013_v50 = vpop.permute.xlu1 %149 }
 0x228   :  { %3331 = vst [vmem:[#allocation14_spill] sm:$0xff] %v3013_v50 }
 0x22d   :  { %v2569_v60 = vpop.eup %2568 }
 0x22e   :  { %v800_v61 = vadd.f32 1.0, %v2569_v60 }
 0x230   :  { %2570 = vrcp.f32 %v800_v61  ;;  %v181_v61 = vmul.f32 %v2857_v5, %v125_v58 }
 0x231   :  { %2572 = vtanh.f32 %v804_v62  ;;  %v182_v62 = vmul.f32 %v2859_v7, %v125_v58 }
 0x23a   :  { %v2571_v0 = vpop.eup %2570 }
 0x23b   :  { %v808_v16 = vrot.slane %v2571_v0, 2  ;;  %v2573_v13 = vpop.eup %2572  ;;  %v814_v1 = vrot.slane %v2571_v0, 4 }
 0x23c   :  { %v811_v31 = vmul.f32 %v2573_v13, %v2571_v0  ;;  %v183_v0 = vmul.f32 %v2861_v8, %v125_v58  ;;  %v235_v13 = vadd.f32 %v2868_v17, %v181_v61 }
 0x23d   :  { %v810_v14 = vmul.f32 %v808_v16, %v2890_v57  ;;  %v184_v16 = vmul.f32 %v2863_v12, %v125_v58 }
 0x23f   :  { %v2970_v27 = vadd.f32 %v811_v31, %v810_v14  ;;  %v236_v31 = vadd.f32 %v2870_v21, %v182_v62  ;;  %v237_v14 = vadd.f32 %v2872_v25, %v183_v0 }
 0x241   :  { %2574 = vtanh.f32 %v2970_v27 }
 0x24b   :  { %v2575_v32 = vpop.eup %2574 }
 0x24c   :  { %v816_v35 = vmul.f32 %v2575_v32, %v814_v1  ;;  %v238_v1 = vadd.f32 %v2874_v26, %v184_v16  ;;  %v325_v32 = vcombine.low %v235_v13, %v236_v31 }
 0x24e   :  { %818 = vst [vmem:[#allocation3 + $0x2] sm:$0x3] %v816_v35  ;;  %886 = vmatmul.mubr.f32.vlgmr.msra.gmra.mrb[4].mxu0 %v816_v35  ;;  %957 = vmatmul.mubr.f32.vlgmr.msra.gmra.mrb[4].mxu1 %v816_v35  ;;  %v326_v35 = vcombine.low %v237_v14, %v238_v1 }
 0x24f   :  { %2235 = vmatpush1.bf16.msra.mxu0 %v2712_v11  ;;  %2267 = vmatpush1.bf16.msra.mxu1 %v2715_v15 }
 0x250   :  { %2237 = vmatprep.subr.bf16.mxu0 %v2719_v19  ;;  %2269 = vmatprep.subr.bf16.mxu1 %v2721_v20 }
 0x251   :  { %1074 = vmatprep.mubr.f32.mxu0 %v3329_v34  ;;  %1145 = vmatprep.mubr.f32.mxu1 %v3329_v34 }
 0x253   :  { %2239 = vmatpush1.bf16.msra.mxu0 %v2724_v24  ;;  %2271 = vmatpush1.bf16.msra.mxu1 %v2728_v28 }
 0x254   :  { %2241 = vmatprep.subr.bf16.mxu0 %v2730_v29  ;;  %2273 = vmatprep.subr.bf16.mxu1 %v2732_v33 }
 0x255   :  { %v1954_v57 = vld [vmem:[#allocation3 + $0x2] sm:$0x3] }
 0x256   :  { %v1969_v38 = vmul.f32 %v2902_v63, %v1954_v57 }
 0x257   :  { %2243 = vmatpush1.bf16.msra.mxu0 %v2735_v37  ;;  %2275 = vmatpush1.bf16.msra.mxu1 %v2739_v41 }
 0x258   :  { %v1980_v44 = vsel %vm1976_vm0, %v1969_v38, 0.0  ;;  %2245 = vmatprep.subr.bf16.mxu0 %v2741_v42  ;;  %2277 = vmatprep.subr.bf16.mxu1 %v2744_v46 }
 0x259   :  { %1981 = vadd.xlane.f32.xlu1 %v1980_v44  ;;  %v333_v44 = vrot.slane %v325_v32, %v2884_v49 }
 0x25b   :  { %2247 = vmatpush1.bf16.msra.mxu0 %v2747_v53  ;;  %2279 = vmatpush1.bf16.msra.mxu1 %v2751_v54 }
 0x25c   :  { %2249 = vmatprep.subr.bf16.mxu0 %v2753_v55  ;;  %2281 = vmatprep.subr.bf16.mxu1 %v2756_v59 }
 0x25f   :  { %2251 = vmatpush1.bf16.msra.mxu0 %v2759_v2  ;;  %2283 = vmatpush1.bf16.msra.mxu1 %v2763_v3 }
 0x260   :  { %2253 = vmatprep.subr.bf16.mxu0 %v2765_v4  ;;  %2285 = vmatprep.subr.bf16.mxu1 %v2768_v9 }
 0x263   :  { %2255 = vmatpush1.bf16.msra.mxu0 %v2771_v18  ;;  %2287 = vmatpush1.bf16.msra.mxu1 %v2775_v22 }
 0x264   :  { %2257 = vmatprep.subr.bf16.mxu0 %v2777_v23  ;;  %2289 = vmatprep.subr.bf16.mxu1 %v2783_v30 }
 0x267   :  { %2259 = vmatpush1.bf16.msra.mxu0 %v2789_v39  ;;  %2291 = vmatpush1.bf16.msra.mxu1 %v2793_v40 }
 0x268   :  { %2261 = vmatprep.subr.bf16.mxu0 %v2795_v43  ;;  %2293 = vmatprep.subr.bf16.mxu1 %v2798_v47 }
 0x26b   :  { %2263 = vmatpush1.bf16.msra.mxu0 %v2804_v51  ;;  %2295 = vmatpush1.bf16.msra.mxu1 %v2808_v52 }
 0x26c   :  { %2297 = vmatprep.subr.bf16.mxu0 %v2708_v6  ;;  %2329 = vmatprep.subr.bf16.mxu1 %v2710_v10 }
 0x2e6   :  { %v1982_v56 = vpop.xlane.xlu1 %1981 }
 0x2e7   :  { %v2009_v60 = vadd.f32 %v2950_v36, %v1982_v56  ;;  %v340_v56 = vrot.slane %v326_v35, %v2884_v49 }
 0x2e9   :  { %2018 = vst.msk [vmem:[%s3311_s6 + $0x2] sm:$0x3] %vm2016_vm1, %v2009_v60  ;;  %v341_v17 = vcombine.low %v333_v44, %v340_v56 }
 0x321   :  { %v887_v57 = vpop.f32.mrb[4].mxu0  ;;  %v958_v38 = vpop.f32.mrb[4].mxu1 }
 0x322   :  { %v889_v60 = vpop.f32.mrb[5].mxu0  ;;  %v960_v50 = vpop.f32.mrb[5].mxu1 }
 0x323   :  { %v967_v48 = vcombine.low %v887_v57, %v889_v60  ;;  %v968_v58 = vcombine.low %v958_v38, %v960_v50  ;;  %v185_v60 = vmul.f32 %v2857_v5, %v3009_v45 }
 0x325   :  { %v975_v61 = vrot.slane %v967_v48, %v2884_v49  ;;  %v982_v62 = vrot.slane %v968_v58, %v2884_v49  ;;  %v186_v58 = vmul.f32 %v2859_v7, %v3009_v45 }
 0x327   :  { %v983_v0 = vcombine.low %v975_v61, %v982_v62  ;;  %v187_v61 = vmul.f32 %v2861_v8, %v3009_v45  ;;  %v188_v62 = vmul.f32 %v2863_v12, %v3009_v45 }
 0x329   :  { %v985_v25 = vadd.f32 %v983_v0, %v341_v17  ;;  %v3332_v0 = vld [vmem:[#allocation8_spill] sm:$0xff] }
 0x32b   :  { %v2032_v16 = vmul.f32 -1.442695, %v985_v25  ;;  %v993_v14 = vrot.slane %v985_v25, 6 }
 0x32d   :  { %2576 = vpow2.f32 %v2032_v16  ;;  %v239_v16 = vadd.f32 %v3332_v0, %v185_v60 }
 0x337   :  { %v2577_v13 = vpop.eup %2576 }
 0x338   :  { %v989_v31 = vadd.f32 1.0, %v2577_v13  ;;  %v240_v13 = vadd.f32 %v2870_v21, %v186_v58 }
 0x33a   :  { %2578 = vrcp.f32 %v989_v31  ;;  %v3333_v31 = vld [vmem:[#allocation9_spill] sm:$0xff] }
 0x33b   :  { %2580 = vtanh.f32 %v993_v14  ;;  %v241_v14 = vadd.f32 %v3333_v31, %v187_v61 }
 0x344   :  { %v2579_v1 = vpop.eup %2578 }
 0x345   :  { %v997_v32 = vrot.slane %v2579_v1, 2  ;;  %v2581_v35 = vpop.eup %2580  ;;  %v1003_v48 = vrot.slane %v2579_v1, 4 }
 0x346   :  { %v1000_v26 = vmul.f32 %v2581_v35, %v2579_v1  ;;  %v3334_v1 = vld [vmem:[#allocation10_spill] sm:$0xff]  ;;  %v342_v35 = vcombine.low %v239_v16, %v240_v13 }
 0x347   :  { %v999_v50 = vmul.f32 %v997_v32, %v2970_v27  ;;  %v242_v32 = vadd.f32 %v3334_v1, %v188_v62 }
 0x349   :  { %v3033_v57 = vadd.f32 %v1000_v26, %v999_v50  ;;  %v343_v50 = vcombine.low %v241_v14, %v242_v32 }
 0x34b   :  { %2582 = vtanh.f32 %v3033_v57 }
 0x355   :  { %v2583_v38 = vpop.eup %2582 }
 0x356   :  { %v1005_v17 = vmul.f32 %v2583_v38, %v1003_v48 }
 0x358   :  { %1007 = vst [vmem:[#allocation3 + $0x4] sm:$0x3] %v1005_v17  ;;  %1075 = vmatmul.mubr.f32.vlgmr.msra.gmra.mrb[6].mxu0 %v1005_v17  ;;  %1146 = vmatmul.mubr.f32.vlgmr.msra.gmra.mrb[6].mxu1 %v1005_v17 }
 0x359   :  { %2299 = vmatpush1.bf16.msra.mxu0 %v2712_v11  ;;  %2331 = vmatpush1.bf16.msra.mxu1 %v2715_v15 }
 0x35a   :  { %2301 = vmatprep.subr.bf16.mxu0 %v2719_v19  ;;  %2333 = vmatprep.subr.bf16.mxu1 %v2721_v20 }
 0x35b   :  { %1263 = vmatprep.mubr.f32.mxu0 %v3329_v34  ;;  %1334 = vmatprep.mubr.f32.mxu1 %v3329_v34 }
 0x35d   :  { %2303 = vmatpush1.bf16.msra.mxu0 %v2724_v24  ;;  %2335 = vmatpush1.bf16.msra.mxu1 %v2728_v28 }
 0x35e   :  { %2305 = vmatprep.subr.bf16.mxu0 %v2730_v29  ;;  %2337 = vmatprep.subr.bf16.mxu1 %v2732_v33 }
 0x35f   :  { %v1955_v25 = vld [vmem:[#allocation3 + $0x4] sm:$0x3] }
 0x360   :  { %v1970_v26 = vmul.f32 %v2902_v63, %v1955_v25 }
 0x361   :  { %2307 = vmatpush1.bf16.msra.mxu0 %v2735_v37  ;;  %2339 = vmatpush1.bf16.msra.mxu1 %v2739_v41 }
 0x362   :  { %v1983_v27 = vsel %vm1976_vm0, %v1970_v26, 0.0  ;;  %2309 = vmatprep.subr.bf16.mxu0 %v2741_v42  ;;  %2341 = vmatprep.subr.bf16.mxu1 %v2744_v46 }
 0x363   :  { %1984 = vadd.xlane.f32.xlu0 %v1983_v27  ;;  %v350_v27 = vrot.slane %v342_v35, %v2884_v49 }
 0x365   :  { %2311 = vmatpush1.bf16.msra.mxu0 %v2747_v53  ;;  %2343 = vmatpush1.bf16.msra.mxu1 %v2751_v54 }
 0x366   :  { %2313 = vmatprep.subr.bf16.mxu0 %v2753_v55  ;;  %2345 = vmatprep.subr.bf16.mxu1 %v2756_v59 }
 0x369   :  { %2315 = vmatpush1.bf16.msra.mxu0 %v2759_v2  ;;  %2347 = vmatpush1.bf16.msra.mxu1 %v2763_v3 }
 0x36a   :  { %2317 = vmatprep.subr.bf16.mxu0 %v2765_v4  ;;  %2349 = vmatprep.subr.bf16.mxu1 %v2768_v9 }
 0x36d   :  { %2319 = vmatpush1.bf16.msra.mxu0 %v2771_v18  ;;  %2351 = vmatpush1.bf16.msra.mxu1 %v2775_v22 }
 0x36e   :  { %2321 = vmatprep.subr.bf16.mxu0 %v2777_v23  ;;  %2353 = vmatprep.subr.bf16.mxu1 %v2783_v30 }
 0x371   :  { %2323 = vmatpush1.bf16.msra.mxu0 %v2789_v39  ;;  %2355 = vmatpush1.bf16.msra.mxu1 %v2793_v40 }
 0x372   :  { %2325 = vmatprep.subr.bf16.mxu0 %v2795_v43  ;;  %2357 = vmatprep.subr.bf16.mxu1 %v2798_v47 }
 0x375   :  { %2327 = vmatpush1.bf16.msra.mxu0 %v2804_v51  ;;  %2359 = vmatpush1.bf16.msra.mxu1 %v2808_v52 }
 0x376   :  { %2361 = vmatprep.subr.bf16.mxu0 %v2708_v6  ;;  %2393 = vmatprep.subr.bf16.mxu1 %v2710_v10 }
 0x3f0   :  { %v1985_v44 = vpop.xlane.xlu0 %1984 }
 0x3f1   :  { %v2010_v56 = vadd.f32 %v2950_v36, %v1985_v44  ;;  %v357_v44 = vrot.slane %v343_v50, %v2884_v49 }
 0x3f3   :  { %2019 = vst.msk [vmem:[%s3311_s6 + $0x4] sm:$0x3] %vm2016_vm1, %v2010_v56  ;;  %v358_v58 = vcombine.low %v350_v27, %v357_v44 }
 0x42b   :  { %v1076_v48 = vpop.f32.mrb[6].mxu0  ;;  %v1147_v38 = vpop.f32.mrb[6].mxu1 }
 0x42c   :  { %v1078_v17 = vpop.f32.mrb[7].mxu0  ;;  %v1149_v25 = vpop.f32.mrb[7].mxu1 }
 0x42d   :  { %v1156_v26 = vcombine.low %v1076_v48, %v1078_v17  ;;  %v1157_v45 = vcombine.low %v1147_v38, %v1149_v25 }
 0x42f   :  { %v1164_v56 = vrot.slane %v1156_v26, %v2884_v49  ;;  %v1171_v60 = vrot.slane %v1157_v45, %v2884_v49 }
 0x431   :  { %v1172_v61 = vcombine.low %v1164_v56, %v1171_v60  ;;  %v3335_v60 = vld [vmem:[#allocation11_spill] sm:$0xff] }
 0x433   :  { %v1174_v31 = vadd.f32 %v1172_v61, %v358_v58  ;;  %v189_v58 = vmul.f32 %v2857_v5, %v3335_v60  ;;  %v190_v61 = vmul.f32 %v2859_v7, %v3335_v60 }
 0x435   :  { %v2033_v62 = vmul.f32 -1.442695, %v1174_v31  ;;  %v1182_v14 = vrot.slane %v1174_v31, 6 }
 0x437   :  { %2584 = vpow2.f32 %v2033_v62  ;;  %v191_v62 = vmul.f32 %v2861_v8, %v3335_v60 }
 0x441   :  { %v2585_v16 = vpop.eup %2584 }
 0x442   :  { %v1178_v13 = vadd.f32 1.0, %v2585_v16  ;;  %v192_v16 = vmul.f32 %v2863_v12, %v3335_v60 }
 0x444   :  { %2586 = vrcp.f32 %v1178_v13  ;;  %v243_v13 = vadd.f32 %v3332_v0, %v189_v58 }
 0x445   :  { %2588 = vtanh.f32 %v1182_v14  ;;  %v244_v14 = vadd.f32 %v2870_v21, %v190_v61 }
 0x44e   :  { %v2587_v32 = vpop.eup %2586 }
 0x44f   :  { %v1186_v48 = vrot.slane %v2587_v32, 2  ;;  %v2589_v35 = vpop.eup %2588  ;;  %v1192_v25 = vrot.slane %v2587_v32, 4 }
 0x450   :  { %v1189_v17 = vmul.f32 %v2589_v35, %v2587_v32  ;;  %v3336_v32 = vld [vmem:[#allocation9_spill] sm:$0xff]  ;;  %v246_v35 = vadd.f32 %v3334_v1, %v192_v16 }
 0x451   :  { %v1188_v50 = vmul.f32 %v1186_v48, %v3033_v57  ;;  %v245_v48 = vadd.f32 %v3336_v32, %v191_v62 }
 0x453   :  { %v3094_v38 = vadd.f32 %v1189_v17, %v1188_v50  ;;  %v359_v17 = vcombine.low %v243_v13, %v244_v14  ;;  %v360_v50 = vcombine.low %v245_v48, %v246_v35 }
 0x455   :  { %2590 = vtanh.f32 %v3094_v38 }
 0x45f   :  { %v2591_v26 = vpop.eup %2590 }
 0x460   :  { %v1194_v27 = vmul.f32 %v2591_v26, %v1192_v25 }
 0x462   :  { %1196 = vst [vmem:[#allocation3 + $0x6] sm:$0x3] %v1194_v27  ;;  %1264 = vmatmul.mubr.f32.vlgmr.msra.gmra.mrb[8].mxu0 %v1194_v27  ;;  %1335 = vmatmul.mubr.f32.vlgmr.msra.gmra.mrb[8].mxu1 %v1194_v27 }
 0x463   :  { %2363 = vmatpush1.bf16.msra.mxu0 %v2712_v11  ;;  %2395 = vmatpush1.bf16.msra.mxu1 %v2715_v15 }
 0x464   :  { %2365 = vmatprep.subr.bf16.mxu0 %v2719_v19  ;;  %2397 = vmatprep.subr.bf16.mxu1 %v2721_v20 }
 0x465   :  { %1452 = vmatprep.mubr.f32.mxu0 %v3329_v34  ;;  %1523 = vmatprep.mubr.f32.mxu1 %v3329_v34 }
 0x467   :  { %2367 = vmatpush1.bf16.msra.mxu0 %v2724_v24  ;;  %2399 = vmatpush1.bf16.msra.mxu1 %v2728_v28 }
 0x468   :  { %2369 = vmatprep.subr.bf16.mxu0 %v2730_v29  ;;  %2401 = vmatprep.subr.bf16.mxu1 %v2732_v33 }
 0x469   :  { %v1956_v57 = vld [vmem:[#allocation3 + $0x6] sm:$0x3] }
 0x46a   :  { %v1971_v31 = vmul.f32 %v2902_v63, %v1956_v57 }
 0x46b   :  { %2371 = vmatpush1.bf16.msra.mxu0 %v2735_v37  ;;  %2403 = vmatpush1.bf16.msra.mxu1 %v2739_v41 }
 0x46c   :  { %v1986_v44 = vsel %vm1976_vm0, %v1971_v31, 0.0  ;;  %2373 = vmatprep.subr.bf16.mxu0 %v2741_v42  ;;  %2405 = vmatprep.subr.bf16.mxu1 %v2744_v46 }
 0x46d   :  { %1987 = vadd.xlane.f32.xlu0 %v1986_v44  ;;  %v367_v44 = vrot.slane %v359_v17, %v2884_v49 }
 0x46f   :  { %2375 = vmatpush1.bf16.msra.mxu0 %v2747_v53  ;;  %2407 = vmatpush1.bf16.msra.mxu1 %v2751_v54 }
 0x470   :  { %2377 = vmatprep.subr.bf16.mxu0 %v2753_v55  ;;  %2409 = vmatprep.subr.bf16.mxu1 %v2756_v59 }
 0x473   :  { %2379 = vmatpush1.bf16.msra.mxu0 %v2759_v2  ;;  %2411 = vmatpush1.bf16.msra.mxu1 %v2763_v3 }
 0x474   :  { %2381 = vmatprep.subr.bf16.mxu0 %v2765_v4  ;;  %2413 = vmatprep.subr.bf16.mxu1 %v2768_v9 }
 0x477   :  { %2383 = vmatpush1.bf16.msra.mxu0 %v2771_v18  ;;  %2415 = vmatpush1.bf16.msra.mxu1 %v2775_v22 }
 0x478   :  { %2385 = vmatprep.subr.bf16.mxu0 %v2777_v23  ;;  %2417 = vmatprep.subr.bf16.mxu1 %v2783_v30 }
 0x47b   :  { %2387 = vmatpush1.bf16.msra.mxu0 %v2789_v39  ;;  %2419 = vmatpush1.bf16.msra.mxu1 %v2793_v40 }
 0x47c   :  { %2389 = vmatprep.subr.bf16.mxu0 %v2795_v43  ;;  %2421 = vmatprep.subr.bf16.mxu1 %v2798_v47 }
 0x47f   :  { %2391 = vmatpush1.bf16.msra.mxu0 %v2804_v51  ;;  %2423 = vmatpush1.bf16.msra.mxu1 %v2808_v52 }
 0x480   :  { %2425 = vmatprep.subr.bf16.mxu0 %v2708_v6  ;;  %2457 = vmatprep.subr.bf16.mxu1 %v2710_v10 }
 0x4fa   :  { %v1988_v45 = vpop.xlane.xlu0 %1987 }
 0x4fb   :  { %v2011_v56 = vadd.f32 %v2950_v36, %v1988_v45  ;;  %v374_v45 = vrot.slane %v360_v50, %v2884_v49 }
 0x4fd   :  { %2020 = vst.msk [vmem:[%s3311_s6 + $0x6] sm:$0x3] %vm2016_vm1, %v2011_v56  ;;  %v375_v61 = vcombine.low %v367_v44, %v374_v45 }
 0x535   :  { %v1265_v25 = vpop.f32.mrb[8].mxu0  ;;  %v1336_v26 = vpop.f32.mrb[8].mxu1 }
 0x536   :  { %v1267_v27 = vpop.f32.mrb[9].mxu0  ;;  %v1338_v57 = vpop.f32.mrb[9].mxu1 }
 0x537   :  { %v1345_v31 = vcombine.low %v1265_v25, %v1267_v27  ;;  %v1346_v56 = vcombine.low %v1336_v26, %v1338_v57 }
 0x539   :  { %v1353_v60 = vrot.slane %v1345_v31, %v2884_v49  ;;  %v1360_v58 = vrot.slane %v1346_v56, %v2884_v49 }
 0x53b   :  { %v1361_v62 = vcombine.low %v1353_v60, %v1360_v58  ;;  %v3337_v58 = vld [vmem:[#allocation13_spill] sm:$0xff] }
 0x53d   :  { %v1363_v32 = vadd.f32 %v1361_v62, %v375_v61  ;;  %v193_v61 = vmul.f32 %v2857_v5, %v3337_v58  ;;  %v194_v62 = vmul.f32 %v2859_v7, %v3337_v58 }
 0x53f   :  { %v2034_v16 = vmul.f32 -1.442695, %v1363_v32  ;;  %v1371_v48 = vrot.slane %v1363_v32, 6 }
 0x541   :  { %2592 = vpow2.f32 %v2034_v16  ;;  %v195_v16 = vmul.f32 %v2861_v8, %v3337_v58 }
 0x54b   :  { %v2593_v13 = vpop.eup %2592 }
 0x54c   :  { %v1367_v14 = vadd.f32 1.0, %v2593_v13  ;;  %v248_v13 = vadd.f32 %v2870_v21, %v194_v62 }
 0x54e   :  { %2594 = vrcp.f32 %v1367_v14  ;;  %v3338_v14 = vld [vmem:[#allocation9_spill] sm:$0xff] }
 0x54f   :  { %2596 = vtanh.f32 %v1371_v48  ;;  %v249_v48 = vadd.f32 %v3338_v14, %v195_v16 }
 0x558   :  { %v2595_v35 = vpop.eup %2594 }
 0x559   :  { %v1375_v25 = vrot.slane %v2595_v35, 2  ;;  %v2597_v17 = vpop.eup %2596  ;;  %v1381_v57 = vrot.slane %v2595_v35, 4 }
 0x55a   :  { %v1378_v27 = vmul.f32 %v2597_v17, %v2595_v35 }
 0x55b   :  { %v1377_v50 = vmul.f32 %v1375_v25, %v3094_v38 }
 0x55d   :  { %v3155_v26 = vadd.f32 %v1378_v27, %v1377_v50 }
 0x55f   :  { %2598 = vtanh.f32 %v3155_v26 }
 0x569   :  { %v2599_v31 = vpop.eup %2598 }
 0x56a   :  { %v1383_v44 = vmul.f32 %v2599_v31, %v1381_v57 }
 0x56c   :  { %1385 = vst [vmem:[#allocation3 + $0x8] sm:$0x3] %v1383_v44  ;;  %1453 = vmatmul.mubr.f32.vlgmr.msra.gmra.mrb[10].mxu0 %v1383_v44  ;;  %1524 = vmatmul.mubr.f32.vlgmr.msra.gmra.mrb[10].mxu1 %v1383_v44 }
 0x56d   :  { %2427 = vmatpush1.bf16.msra.mxu0 %v2712_v11  ;;  %2459 = vmatpush1.bf16.msra.mxu1 %v2715_v15 }
 0x56e   :  { %2429 = vmatprep.subr.bf16.mxu0 %v2719_v19  ;;  %2461 = vmatprep.subr.bf16.mxu1 %v2721_v20 }
 0x56f   :  { %1641 = vmatprep.mubr.f32.mxu0 %v3329_v34  ;;  %1712 = vmatprep.mubr.f32.mxu1 %v3329_v34 }
 0x571   :  { %2431 = vmatpush1.bf16.msra.mxu0 %v2724_v24  ;;  %2463 = vmatpush1.bf16.msra.mxu1 %v2728_v28 }
 0x572   :  { %2433 = vmatprep.subr.bf16.mxu0 %v2730_v29  ;;  %2465 = vmatprep.subr.bf16.mxu1 %v2732_v33 }
 0x573   :  { %v1957_v38 = vld [vmem:[#allocation3 + $0x8] sm:$0x3] }
 0x574   :  { %v1972_v32 = vmul.f32 %v2902_v63, %v1957_v38 }
 0x575   :  { %2435 = vmatpush1.bf16.msra.mxu0 %v2735_v37  ;;  %2467 = vmatpush1.bf16.msra.mxu1 %v2739_v41 }
 0x576   :  { %v1989_v45 = vsel %vm1976_vm0, %v1972_v32, 0.0  ;;  %2437 = vmatprep.subr.bf16.mxu0 %v2741_v42  ;;  %2469 = vmatprep.subr.bf16.mxu1 %v2744_v46 }
 0x577   :  { %1990 = vadd.xlane.f32.xlu1 %v1989_v45 }
 0x579   :  { %2439 = vmatpush1.bf16.msra.mxu0 %v2747_v53  ;;  %2471 = vmatpush1.bf16.msra.mxu1 %v2751_v54 }
 0x57a   :  { %2441 = vmatprep.subr.bf16.mxu0 %v2753_v55  ;;  %2473 = vmatprep.subr.bf16.mxu1 %v2756_v59 }
 0x57d   :  { %2443 = vmatpush1.bf16.msra.mxu0 %v2759_v2  ;;  %2475 = vmatpush1.bf16.msra.mxu1 %v2763_v3 }
 0x57e   :  { %2445 = vmatprep.subr.bf16.mxu0 %v2765_v4  ;;  %2477 = vmatprep.subr.bf16.mxu1 %v2768_v9 }
 0x581   :  { %2447 = vmatpush1.bf16.msra.mxu0 %v2771_v18  ;;  %2479 = vmatpush1.bf16.msra.mxu1 %v2775_v22 }
 0x582   :  { %2449 = vmatprep.subr.bf16.mxu0 %v2777_v23  ;;  %2481 = vmatprep.subr.bf16.mxu1 %v2783_v30 }
 0x585   :  { %2451 = vmatpush1.bf16.msra.mxu0 %v2789_v39  ;;  %2483 = vmatpush1.bf16.msra.mxu1 %v2793_v40 }
 0x586   :  { %2453 = vmatprep.subr.bf16.mxu0 %v2795_v43  ;;  %2485 = vmatprep.subr.bf16.mxu1 %v2798_v47 }
 0x589   :  { %2455 = vmatpush1.bf16.msra.mxu0 %v2804_v51  ;;  %2487 = vmatpush1.bf16.msra.mxu1 %v2808_v52 }
 0x58a   :  { %2489 = vmatprep.subr.bf16.mxu0 %v2708_v6  ;;  %2521 = vmatprep.subr.bf16.mxu1 %v2710_v10  ;;  %v196_v6 = vmul.f32 %v2863_v12, %v3337_v58  ;;  %v247_v10 = vadd.f32 %v3332_v0, %v193_v61 }
 0x58c   :  { %v250_v35 = vadd.f32 %v3334_v1, %v196_v6  ;;  %v376_v25 = vcombine.low %v247_v10, %v248_v13 }
 0x58e   :  { %v377_v17 = vcombine.low %v249_v48, %v250_v35  ;;  %v384_v38 = vrot.slane %v376_v25, %v2884_v49 }
 0x590   :  { %v391_v32 = vrot.slane %v377_v17, %v2884_v49 }
 0x592   :  { %v392_v58 = vcombine.low %v384_v38, %v391_v32 }
 0x604   :  { %v1991_v56 = vpop.xlane.xlu1 %1990 }
 0x605   :  { %v2012_v60 = vadd.f32 %v2950_v36, %v1991_v56 }
 0x607   :  { %2021 = vst.msk [vmem:[%s3311_s6 + $0x8] sm:$0x3] %vm2016_vm1, %v2012_v60 }
 0x63f   :  { %v1454_v27 = vpop.f32.mrb[10].mxu0  ;;  %v1525_v50 = vpop.f32.mrb[10].mxu1 }
 0x640   :  { %v1456_v57 = vpop.f32.mrb[11].mxu0  ;;  %v1527_v31 = vpop.f32.mrb[11].mxu1 }
 0x641   :  { %v1534_v44 = vcombine.low %v1454_v27, %v1456_v57  ;;  %v1535_v45 = vcombine.low %v1525_v50, %v1527_v31 }
 0x643   :  { %v1542_v56 = vrot.slane %v1534_v44, %v2884_v49  ;;  %v1549_v60 = vrot.slane %v1535_v45, %v2884_v49 }
 0x645   :  { %v1550_v61 = vcombine.low %v1542_v56, %v1549_v60 }
 0x647   :  { %v1552_v62 = vadd.f32 %v1550_v61, %v392_v58 }
 0x649   :  { %v2035_v16 = vmul.f32 -1.442695, %v1552_v62  ;;  %v1560_v13 = vrot.slane %v1552_v62, 6 }
 0x64b   :  { %2600 = vpow2.f32 %v2035_v16 }
 0x655   :  { %v2601_v6 = vpop.eup %2600 }
 0x656   :  { %v1556_v10 = vadd.f32 1.0, %v2601_v6 }
 0x658   :  { %2602 = vrcp.f32 %v1556_v10  ;;  %v2624_v10 = vld [vmem:[%s3309_s4] ss:$0 sm:$0xff] }
 0x659   :  { %2604 = vtanh.f32 %v1560_v13 }
 0x662   :  { %v2603_v48 = vpop.eup %2602 }
 0x663   :  { %v1564_v35 = vrot.slane %v2603_v48, 2  ;;  %v2605_v25 = vpop.eup %2604  ;;  %v1570_v57 = vrot.slane %v2603_v48, 4 }
 0x664   :  { %v1567_v27 = vmul.f32 %v2605_v25, %v2603_v48 }
 0x665   :  { %v1566_v17 = vmul.f32 %v1564_v35, %v3155_v26 }
 0x667   :  { %v3216_v50 = vadd.f32 %v1567_v27, %v1566_v17  ;;  %v3340_v27 = vld [vmem:[#allocation14_spill] sm:$0xff] }
 0x668   :  { %v201_v17 = vmul.f32 %v2857_v5, %v3340_v27 }
 0x669   :  { %2606 = vtanh.f32 %v3216_v50 }
 0x673   :  { %v2607_v31 = vpop.eup %2606 }
 0x674   :  { %v1572_v44 = vmul.f32 %v2607_v31, %v1570_v57  ;;  %v203_v57 = vmul.f32 %v2861_v8, %v3340_v27  ;;  %v204_v31 = vmul.f32 %v2863_v12, %v3340_v27 }
 0x676   :  { %1574 = vst [vmem:[#allocation3 + $0xa] sm:$0x3] %v1572_v44  ;;  %1642 = vmatmul.mubr.f32.vlgmr.msra.gmra.mrb[12].mxu0 %v1572_v44  ;;  %1713 = vmatmul.mubr.f32.vlgmr.msra.gmra.mrb[12].mxu1 %v1572_v44  ;;  %v255_v44 = vadd.f32 %v3332_v0, %v201_v17 }
 0x677   :  { %2491 = vmatpush1.bf16.msra.mxu0 %v2712_v11  ;;  %2523 = vmatpush1.bf16.msra.mxu1 %v2715_v15 }
 0x678   :  { %2493 = vmatprep.subr.bf16.mxu0 %v2719_v19  ;;  %2525 = vmatprep.subr.bf16.mxu1 %v2721_v20 }
 0x679   :  { %1830 = vmatprep.mubr.f32.mxu0 %v3329_v34  ;;  %1901 = vmatprep.mubr.f32.mxu1 %v3329_v34 }
 0x67b   :  { %2495 = vmatpush1.bf16.msra.mxu0 %v2724_v24  ;;  %2527 = vmatpush1.bf16.msra.mxu1 %v2728_v28  ;;  %v3339_v24 = vld [vmem:[#allocation12_spill] sm:$0xff] }
 0x67c   :  { %2497 = vmatprep.subr.bf16.mxu0 %v2730_v29  ;;  %2529 = vmatprep.subr.bf16.mxu1 %v2732_v33  ;;  %v197_v28 = vmul.f32 %v2857_v5, %v3339_v24  ;;  %v198_v29 = vmul.f32 %v2859_v7, %v3339_v24  ;;  %v199_v33 = vmul.f32 %v2861_v8, %v3339_v24 }
 0x67d   :  { %v1958_v26 = vld [vmem:[#allocation3 + $0xa] sm:$0x3] }
 0x67e   :  { %v1973_v11 = vmul.f32 %v2902_v63, %v1958_v26  ;;  %v257_v26 = vadd.f32 %v3338_v14, %v203_v57 }
 0x67f   :  { %2499 = vmatpush1.bf16.msra.mxu0 %v2735_v37  ;;  %2531 = vmatpush1.bf16.msra.mxu1 %v2739_v41  ;;  %v200_v37 = vmul.f32 %v2863_v12, %v3339_v24  ;;  %v251_v41 = vadd.f32 %v3332_v0, %v197_v28 }
 0x680   :  { %v1992_v15 = vsel %vm1976_vm0, %v1973_v11, 0.0  ;;  %2501 = vmatprep.subr.bf16.mxu0 %v2741_v42  ;;  %2533 = vmatprep.subr.bf16.mxu1 %v2744_v46  ;;  %v252_v42 = vadd.f32 %v2870_v21, %v198_v29  ;;  %v253_v46 = vadd.f32 %v3338_v14, %v199_v33  ;;  %v258_v11 = vadd.f32 %v3334_v1, %v204_v31 }
 0x681   :  { %1993 = vadd.xlane.f32.xlu0 %v1992_v15 }
 0x683   :  { %2503 = vmatpush1.bf16.msra.mxu0 %v2747_v53  ;;  %2535 = vmatpush1.bf16.msra.mxu1 %v2751_v54  ;;  %v254_v53 = vadd.f32 %v3334_v1, %v200_v37  ;;  %v393_v54 = vcombine.low %v251_v41, %v252_v42 }
 0x684   :  { %2505 = vmatprep.subr.bf16.mxu0 %v2753_v55  ;;  %2537 = vmatprep.subr.bf16.mxu1 %v2756_v59 }
 0x685   :  { %v394_v55 = vcombine.low %v253_v46, %v254_v53 }
 0x687   :  { %2507 = vmatpush1.bf16.msra.mxu0 %v2759_v2  ;;  %2539 = vmatpush1.bf16.msra.mxu1 %v2763_v3 }
 0x688   :  { %2509 = vmatprep.subr.bf16.mxu0 %v2765_v4  ;;  %2541 = vmatprep.subr.bf16.mxu1 %v2768_v9 }
 0x68b   :  { %2511 = vmatpush1.bf16.msra.mxu0 %v2771_v18  ;;  %2543 = vmatpush1.bf16.msra.mxu1 %v2775_v22  ;;  %v401_v18 = vrot.slane %v393_v54, %v2884_v49  ;;  %v408_v22 = vrot.slane %v394_v55, %v2884_v49 }
 0x68c   :  { %2513 = vmatprep.subr.bf16.mxu0 %v2777_v23  ;;  %2545 = vmatprep.subr.bf16.mxu1 %v2783_v30 }
 0x68f   :  { %2515 = vmatpush1.bf16.msra.mxu0 %v2789_v39  ;;  %2547 = vmatpush1.bf16.msra.mxu1 %v2793_v40  ;;  %v409_v40 = vcombine.low %v401_v18, %v408_v22 }
 0x690   :  { %2517 = vmatprep.subr.bf16.mxu0 %v2795_v43  ;;  %2549 = vmatprep.subr.bf16.mxu1 %v2798_v47 }
 0x693   :  { %2519 = vmatpush1.bf16.msra.mxu0 %v2804_v51  ;;  %2551 = vmatpush1.bf16.msra.mxu1 %v2808_v52 }
 0x70e   :  { %v1994_v19 = vpop.xlane.xlu0 %1993 }
 0x70f   :  { %v2013_v20 = vadd.f32 %v2950_v36, %v1994_v19  ;;  %v411_v19 = vcombine.low %v257_v26, %v258_v11 }
 0x711   :  { %2022 = vst.msk [vmem:[%s3311_s6 + $0xa] sm:$0x3] %vm2016_vm1, %v2013_v20  ;;  %v425_v29 = vrot.slane %v411_v19, %v2884_v49 }
 0x749   :  { %v1643_v59 = vpop.f32.mrb[12].mxu0  ;;  %v1714_v2 = vpop.f32.mrb[12].mxu1 }
 0x74a   :  { %v1645_v3 = vpop.f32.mrb[13].mxu0  ;;  %v1716_v4 = vpop.f32.mrb[13].mxu1 }
 0x74b   :  { %v1723_v9 = vcombine.low %v1643_v59, %v1645_v3  ;;  %v1724_v23 = vcombine.low %v1714_v2, %v1716_v4 }
 0x74d   :  { %v1731_v30 = vrot.slane %v1723_v9, %v2884_v49  ;;  %v1738_v39 = vrot.slane %v1724_v23, %v2884_v49 }
 0x74f   :  { %v1739_v43 = vcombine.low %v1731_v30, %v1738_v39  ;;  %v2625_v39 = vld [vmem:[#allocation4] ss:$0 sm:$0xff] }
 0x751   :  { %v1741_v47 = vadd.f32 %v1739_v43, %v409_v40 }
 0x753   :  { %v2036_v51 = vmul.f32 -1.442695, %v1741_v47  ;;  %v1749_v34 = vrot.slane %v1741_v47, 6 }
 0x755   :  { %2608 = vpow2.f32 %v2036_v51 }
 0x75f   :  { %v2609_v52 = vpop.eup %2608 }
 0x760   :  { %v1745_v63 = vadd.f32 1.0, %v2609_v52 }
 0x762   :  { %2610 = vrcp.f32 %v1745_v63 }
 0x763   :  { %2612 = vtanh.f32 %v1749_v34 }
 0x76c   :  { %v2611_v38 = vpop.eup %2610 }
 0x76d   :  { %v1753_v32 = vrot.slane %v2611_v38, 2  ;;  %v2613_v45 = vpop.eup %2612  ;;  %v1759_v61 = vrot.slane %v2611_v38, 4 }
 0x76e   :  { %v1756_v56 = vmul.f32 %v2613_v45, %v2611_v38 }
 0x76f   :  { %v1755_v60 = vmul.f32 %v1753_v32, %v3216_v50  ;;  %v202_v50 = vmul.f32 %v2859_v7, %v3340_v27 }
 0x771   :  { %v1757_v58 = vadd.f32 %v1756_v56, %v1755_v60 }
 0x773   :  { %2614 = vtanh.f32 %v1757_v58 }
 0x77d   :  { %v2615_v62 = vpop.eup %2614 }
 0x77e   :  { %v1761_v16 = vmul.f32 %v2615_v62, %v1759_v61 }
 0x780   :  { %1763 = vst [vmem:[#allocation3 + $0xc] sm:$0x3] %v1761_v16  ;;  %1831 = vmatmul.mubr.f32.vlgmr.msra.gmra.mrb[14].mxu0 %v1761_v16  ;;  %1902 = vmatmul.mubr.f32.vlgmr.msra.gmra.mrb[14].mxu1 %v1761_v16 }
 0x787   :  { %v1959_v6 = vld [vmem:[#allocation3 + $0xc] sm:$0x3] }
 0x788   :  { %v1974_v13 = vmul.f32 %v2624_v10, %v1959_v6 }
 0x78a   :  { %v1995_v48 = vsel %vm1976_vm0, %v1974_v13, 0.0 }
 0x78b   :  { %1996 = vadd.xlane.f32.xlu1 %v1995_v48 }
 0x818   :  { %v1997_v35 = vpop.xlane.xlu1 %1996 }
 0x819   :  { %v2014_v25 = vadd.f32 %v2950_v36, %v1997_v35  ;;  %v256_v36 = vadd.f32 %v2870_v21, %v202_v50 }
 0x81b   :  { %2023 = vst.msk [vmem:[%s3311_s6 + $0xc] sm:$0x3] %vm2016_vm1, %v2014_v25  ;;  %v410_v15 = vcombine.low %v255_v44, %v256_v36 }
 0x81d   :  { %v418_v8 = vrot.slane %v410_v15, %v2884_v49 }
 0x81f   :  { %v426_v33 = vcombine.low %v418_v8, %v425_v29 }
 0x853   :  { %v1832_v5 = vpop.f32.mrb[14].mxu0  ;;  %v1903_v20 = vpop.f32.mrb[14].mxu1 }
 0x854   :  { %v1834_v24 = vpop.f32.mrb[15].mxu0  ;;  %v1905_v7 = vpop.f32.mrb[15].mxu1 }
 0x855   :  { %v1912_v28 = vcombine.low %v1832_v5, %v1834_v24  ;;  %v1913_v12 = vcombine.low %v1903_v20, %v1905_v7 }
 0x857   :  { %v1920_v0 = vrot.slane %v1912_v28, %v2884_v49  ;;  %v1927_v21 = vrot.slane %v1913_v12, %v2884_v49 }
 0x859   :  { %v1928_v14 = vcombine.low %v1920_v0, %v1927_v21 }
 0x85b   :  { %v1930_v37 = vadd.f32 %v1928_v14, %v426_v33 }
 0x85d   :  { %v2037_v1 = vmul.f32 -1.442695, %v1930_v37  ;;  %v1938_v46 = vrot.slane %v1930_v37, 6 }
 0x85f   :  { %2616 = vpow2.f32 %v2037_v1 }
 0x869   :  { %v2617_v41 = vpop.eup %2616 }
 0x86a   :  { %v1934_v42 = vadd.f32 1.0, %v2617_v41 }
 0x86c   :  { %2618 = vrcp.f32 %v1934_v42 }
 0x86d   :  { %2620 = vtanh.f32 %v1938_v46 }
 0x876   :  { %v2619_v53 = vpop.eup %2618 }
 0x877   :  { %v1942_v54 = vrot.slane %v2619_v53, 2  ;;  %v2621_v55 = vpop.eup %2620  ;;  %v1948_v4 = vrot.slane %v2619_v53, 4 }
 0x878   :  { %v1945_v2 = vmul.f32 %v2621_v55, %v2619_v53 }
 0x879   :  { %v1944_v59 = vmul.f32 %v1942_v54, %v1757_v58 }
 0x87b   :  { %v1946_v3 = vadd.f32 %v1945_v2, %v1944_v59 }
 0x87d   :  { %2622 = vtanh.f32 %v1946_v3 }
 0x887   :  { %v2623_v9 = vpop.eup %2622 }
 0x888   :  { %v1950_v49 = vmul.f32 %v2623_v9, %v1948_v4 }
 0x88a   :  { %1952 = vst [vmem:[#allocation3 + $0xe] sm:$0x3] %v1950_v49 }
 0x891   :  { %v1960_v18 = vld [vmem:[#allocation3 + $0xe] sm:$0x3] }
 0x892   :  { %v1975_v22 = vmul.f32 %v2624_v10, %v1960_v18 }
 0x894   :  { %v1998_v23 = vsel %vm1976_vm0, %v1975_v22, 0.0 }
 0x895   :  { %1999 = vadd.xlane.f32.xlu0 %v1998_v23 }
 0x922   :  { %v2000_v30 = vpop.xlane.xlu0 %1999 }
 0x923   :  { %v2015_v40 = vadd.f32 %v2625_v39, %v2000_v30 }
 0x925   :  { %2024 = vst.msk [vmem:[%s3311_s6 + $0xe] sm:$0x3] %vm2016_vm1, %v2015_v40 }
 0x926   :  { %2029 = vsyncpa [#allocation6], 1 }

</bundles_post_ra>
